<compile_context>
chip_gen: v7x
topology: tpu7x:2x2x1
jax: 0.10.0
libtpu: 0.0.40
codegen_flags: <defaults>
</compile_context>

<pallas_src>
import functools

import jax
import jax.numpy as jnp
from jax.experimental import pallas as pl
from jax.experimental.pallas import tpu as pltpu


def _pred_layer_kernel(qa_ref, aemb_ref, wqp_ref, vq_ref, wp2_ref, vp_ref,
                       wpred_ref, score_ref, *, Lq):
    Bt, L, H2 = qa_ref.shape
    H = vq_ref.shape[1]

    qa = qa_ref[...]                                    # (Bt, L, 2H) bf16
    vq_row = vq_ref[...]                                # (1, H) f32
    vp_row = vp_ref[...]                                # (1, H) f32

    # ---- fused [Wq | Wp1] GEMM over the concatenated (q ++ agg) rows --------
    r = jnp.dot(qa.reshape(Bt * L, H2), wqp_ref[...],
                preferred_element_type=jnp.float32)     # (Bt*L, 2H) f32
    r = r.reshape(Bt, L, 2 * H)
    h = jnp.tanh(r[:, :Lq, :H])                         # tanh(q Wq)    (Bt,Lq,H)
    t1 = r[:, Lq:, H:]                                  # agg Wp1       (Bt,La,H)

    q_f = qa[:, :Lq, :].astype(jnp.float32)             # (Bt, Lq, 2H)
    agg_f = qa[:, Lq:, :].astype(jnp.float32)           # (Bt, La, 2H)

    # ---- question attention: alpha = softmax_j(vq . tanh(Wq q)) -------------
    sj = jnp.sum(h * vq_row, axis=-1)                   # (Bt, Lq)
    sj = sj - jnp.max(sj, axis=-1, keepdims=True)
    e1 = jnp.exp(sj)
    alpha = e1 * pl.reciprocal(jnp.sum(e1, axis=-1, keepdims=True), approx=True)
    rq = jnp.sum(alpha[:, :, None] * q_f, axis=1)       # (Bt, 2H)

    # ---- aggregation attention: beta = softmax_l(vp.(Wp1 agg + Wp2 rq)) -----
    t2 = jnp.dot(rq, wp2_ref[...], preferred_element_type=jnp.float32)   # (Bt, H)
    t = t1 + t2[:, None, :]                             # (Bt, La, H)
    s2 = jnp.sum(t * vp_row, axis=-1)                   # (Bt, La)
    s2 = s2 - jnp.max(s2, axis=-1, keepdims=True)
    e2 = jnp.exp(s2)
    beta = e2 * pl.reciprocal(jnp.sum(e2, axis=-1, keepdims=True), approx=True)
    rp = jnp.sum(beta[:, :, None] * agg_f, axis=1)      # (Bt, 2H)

    # ---- prediction head: dropout(leaky_relu(prediction(rp))) ---------------
    pred = jnp.dot(rp, wpred_ref[...], preferred_element_type=jnp.float32)  # (Bt, E)
    act = jnp.where(pred >= 0, pred, jnp.float32(0.01) * pred)
    # TODO(synk): stochastic F.dropout for opts['dropout'] > 0 omitted; p=0.0 is identity.

    # ---- answer scoring: softmax over candidates (contract on E, no .T) -----
    logits = jnp.sum(aemb_ref[...].astype(jnp.float32) * act[:, None, :], axis=-1)  # (Bt, A)
    logits = logits - jnp.max(logits, axis=-1, keepdims=True)
    el = jnp.exp(logits)
    score_ref[...] = el * pl.reciprocal(jnp.sum(el, axis=-1, keepdims=True),
                                        approx=True)


def _round_up(x, m):
    return ((x + m - 1) // m) * m


def _vmem_limit_bytes():
    """Generation-aware scoped-VMEM limit (~70% of capacity, clamped)."""
    cap = 64 * 1024 * 1024                    # conservative fallback (v7x per-TC)
    try:
        info = pltpu.get_tpu_info()
        cap_attr = getattr(info, "vmem_capacity_bytes", None)
        if cap_attr:
            cap = int(cap_attr)
    except Exception:
        pass
    # v5e/v6e (128 MiB) -> ~90 MiB;  v7x (64 MiB/TC) -> ~45 MiB.
    return max(32 * 1024 * 1024, min(int(cap * 0.70), 96 * 1024 * 1024))


def _choose_block_batch(B, per_batch_bytes, vmem_limit):
    """Batch-block size: multiple of 8 when splitting, targeting >= 4 steps."""
    budget = vmem_limit // 2                              # headroom for pipeline
    cap = max(8, (budget // max(per_batch_bytes, 1)) // 8 * 8)
    # >= 4 grid steps when possible: 2 per TensorCore on v7x megacore and
    # enough steps everywhere for DMA prefetch to overlap compute.
    target = _round_up(max(1, -(-B // 4)), 8)
    Bt = min(cap, target)
    if Bt >= B:
        return B                                          # tiny batch: one unpadded block
    return Bt


def pred_layer_scores(q_encoder, aggregation, a_embedding, params):
    """Returns score of shape (B, A) — softmax over candidate answers."""
    B, Lq, H2 = q_encoder.shape
    _, La, _ = aggregation.shape
    _, A, E = a_embedding.shape
    wq, vq, wp1, wp2, vp, wpred = params
    H = wq.shape[1]
    L = Lq + La

    # Wrapper-side fusion & dtype prep (free XLA ops, no in-kernel copies):
    qa = jnp.concatenate([q_encoder, aggregation], axis=1).astype(jnp.bfloat16)  # (B, L, 2H)
    aemb = a_embedding.astype(jnp.bfloat16)                                      # (B, A, E)
    w_qp = jnp.concatenate([wq, wp1], axis=1).astype(jnp.bfloat16)               # (2H, 2H)
    vq_row = jnp.reshape(vq, (1, H)).astype(jnp.float32)
    vp_row = jnp.reshape(vp, (1, H)).astype(jnp.float32)
    wp2_f = wp2.astype(jnp.float32)      # tiny; LHS (rq) is f32 -> keep f32 matmul
    wpred_f = wpred.astype(jnp.float32)

    vmem_limit = _vmem_limit_bytes()
    per_batch = (2 * 2 * (L * H2 + A * E)                        # bf16 inputs, double-buffered
                 + 4 * (3 * L * H2 + 2 * L * H + A * E + 4 * A)  # f32 intermediates
                 + 2 * 4 * A)                                    # f32 output, double-buffered
    Bt = _choose_block_batch(B, per_batch, vmem_limit)
    nb = pl.cdiv(B, Bt)
    B_pad = nb * Bt
    if B_pad != B:
        pad = [(0, B_pad - B), (0, 0), (0, 0)]
        qa = jnp.pad(qa, pad)
        aemb = jnp.pad(aemb, pad)

    flops_per_b = (2 * L * H2 * 2 * H + 2 * H2 * H + 2 * H2 * E
                   + 2 * (Lq * H + La * H + Lq * H2 + La * H2 + A * E))
    cost = pl.CostEstimate(
        flops=B_pad * flops_per_b,
        transcendentals=B_pad * (Lq * H + Lq + La + A + 3),
        bytes_accessed=(2 * B_pad * (L * H2 + A * E) + 4 * B_pad * A
                        + 2 * H2 * 2 * H + 4 * (H2 * H + H2 * E + 2 * H)))

    grid_spec = pltpu.PrefetchScalarGridSpec(
        num_scalar_prefetch=0,
        grid=(nb,),
        in_specs=[
            pl.BlockSpec((Bt, L, H2), lambda b: (b, 0, 0)),   # qa = [q ; agg]  (bf16)
            pl.BlockSpec((Bt, A, E), lambda b: (b, 0, 0)),    # a_embedding     (bf16)
            pl.BlockSpec((H2, 2 * H), lambda b: (0, 0)),      # [Wq | Wp1]      (bf16)
            pl.BlockSpec((1, H), lambda b: (0, 0)),           # vq row          (f32)
            pl.BlockSpec((H2, H), lambda b: (0, 0)),          # Wp2             (f32)
            pl.BlockSpec((1, H), lambda b: (0, 0)),           # vp row          (f32)
            pl.BlockSpec((H2, E), lambda b: (0, 0)),          # prediction      (f32)
        ],
        out_specs=pl.BlockSpec((Bt, A), lambda b: (b, 0)),
    )
    out = pl.pallas_call(
        functools.partial(_pred_layer_kernel, Lq=Lq),
        out_shape=jax.ShapeDtypeStruct((B_pad, A), jnp.float32),
        grid_spec=grid_spec,
        compiler_params=pltpu.CompilerParams(
            dimension_semantics=("parallel",),
            vmem_limit_bytes=vmem_limit),
        cost_estimate=cost,
    )(qa, aemb, w_qp, vq_row, wp2_f, vp_row, wpred_f)
    return out[:B]


def pred_layer_loss(q_encoder, aggregation, a_embedding, params):
    """is_train=True path: hinge/margin loss over scores (mirrors PyTorch,
    including the max over ALL columns — exactly torch.max(score, dim=1))."""
    score = pred_layer_scores(q_encoder, aggregation, a_embedding, params)
    correct = score[:, 0]
    m_score = jnp.max(score, axis=1)
    margin = jnp.float32(1.5) + correct - m_score
    L = jnp.maximum(jnp.float32(0.0), margin)
    return jnp.mean(L), score


def _xavier_uniform(key, in_f, out_f, gain=0.1):
    # torch.nn.init.xavier_uniform_(weight, 0.1); weight is (out_f, in_f),
    # we store the transpose (in_f, out_f) — same bound either way.
    bound = gain * (6.0 / (in_f + out_f)) ** 0.5
    return jax.random.uniform(key, (in_f, out_f), jnp.float32, -bound, bound)


def _reference_scores(q, agg, aemb, params):
    wq, vq, wp1, wp2, vp, wpred = params
    sj = jnp.einsum('blh,ho->blo', jnp.tanh(jnp.einsum('bld,dh->blh', q, wq)), vq)
    alpha = jax.nn.softmax(jnp.swapaxes(sj, 1, 2), axis=2)                # (B,1,Lq)
    rq = jnp.einsum('bql,bld->bqd', alpha, q)                             # (B,1,2H)
    t = jnp.einsum('bld,dh->blh', agg, wp1) + jnp.einsum('bqd,dh->bqh', rq, wp2)
    beta = jax.nn.softmax(jnp.swapaxes(jnp.einsum('blh,ho->blo', t, vp), 1, 2), axis=2)
    rp = jnp.einsum('bql,bld->bqd', beta, agg)                            # (B,1,2H)
    pred = jnp.einsum('bqd,de->bqe', rp, wpred)
    act = jnp.where(pred >= 0, pred, 0.01 * pred)
    logits = jnp.einsum('bae,bqe->ba', aemb, act)
    return jax.nn.softmax(logits, axis=1)


if __name__ == "__main__":
    # Small shapes consistent with the forward pass; B=12 exercises the
    # multi-step grid (Bt=8, nb=2) plus batch padding.
    B, Lq, La, A = 12, 8, 8, 4
    hidden, emb = 16, 16          # opts['hidden_size'], opts['emb_size']
    H2 = 2 * hidden

    key = jax.random.PRNGKey(0)
    k = jax.random.split(key, 9)

    def bf16_round(x):
        # Pre-round to bf16-representable values so the f32 reference sees the
        # exact same data the kernel's bf16 path consumes.
        return x.astype(jnp.bfloat16).astype(jnp.float32)

    q_encoder = bf16_round(jax.random.normal(k[0], (B, Lq, H2), jnp.float32))
    aggregation = bf16_round(jax.random.normal(k[1], (B, La, H2), jnp.float32))
    a_embedding = bf16_round(jax.random.normal(k[2], (B, A, emb), jnp.float32))

    params = (
        bf16_round(_xavier_uniform(k[3], H2, hidden)),   # Wq  (used in bf16 GEMM)
        _xavier_uniform(k[4], hidden, 1),                # vq
        bf16_round(_xavier_uniform(k[5], H2, hidden)),   # Wp1 (used in bf16 GEMM)
        _xavier_uniform(k[6], H2, hidden),               # Wp2
        _xavier_uniform(k[7], hidden, 1),                # vp
        _xavier_uniform(k[8], H2, emb),                  # prediction
    )

    loss, score = jax.jit(pred_layer_loss)(q_encoder, aggregation, a_embedding, params)
    loss = jax.block_until_ready(loss)
    score = jax.block_until_ready(score)

    # Correctness check against a pure-JAX f32 reference of the same math.
    # Tolerance covers the approximate EUP reciprocal + bf16 matmul operands
    # (structural errors would be >> 1e-2 on a 4-way softmax).
    ref_score = _reference_scores(q_encoder, aggregation, a_embedding, params)
    assert score.shape == (B, A)
    assert jnp.allclose(score, ref_score, atol=5e-3, rtol=5e-3), (
        float(jnp.max(jnp.abs(score - ref_score))))
    ref_loss = jnp.mean(jnp.maximum(0.0, 1.5 + ref_score[:, 0] - jnp.max(ref_score, axis=1)))
    assert jnp.allclose(loss, ref_loss, atol=1e-2), (float(loss), float(ref_loss))

    print("KERNEL_OK")
</pallas_src>

<mosaic_0001>
module attributes {stable_mosaic.version = 11 : i64} {
  func.func @_pred_layer_kernel(%arg0: i32, %arg1: memref<8x16x32xbf16, #tpu.memory_space<vmem>>, %arg2: memref<8x4x16xbf16, #tpu.memory_space<vmem>>, %arg3: memref<32x32xbf16, #tpu.memory_space<vmem>>, %arg4: memref<1x16xf32, #tpu.memory_space<vmem>>, %arg5: memref<32x16xf32, #tpu.memory_space<vmem>>, %arg6: memref<1x16xf32, #tpu.memory_space<vmem>>, %arg7: memref<32x16xf32, #tpu.memory_space<vmem>>, %arg8: memref<8x4xf32, #tpu.memory_space<vmem>>) attributes {dimension_semantics = [#tpu.dimension_semantics<parallel>], iteration_bounds = array<i64: 2>, scalar_prefetch = 0 : i64, scratch_operands = 0 : i64, tpu.core_type = #tpu.core_type<tc>, window_params = [{transform_indices = @transform_0, window_bounds = array<i64: 8, 16, 32>}, {transform_indices = @transform_1, window_bounds = array<i64: 8, 4, 16>}, {pipeline_mode = #tpu.pipeline_mode<synchronous>, transform_indices = @transform_2, window_bounds = array<i64: 32, 32>}, {pipeline_mode = #tpu.pipeline_mode<synchronous>, transform_indices = @transform_3, window_bounds = array<i64: 1, 16>}, {pipeline_mode = #tpu.pipeline_mode<synchronous>, transform_indices = @transform_4, window_bounds = array<i64: 32, 16>}, {pipeline_mode = #tpu.pipeline_mode<synchronous>, transform_indices = @transform_5, window_bounds = array<i64: 1, 16>}, {pipeline_mode = #tpu.pipeline_mode<synchronous>, transform_indices = @transform_6, window_bounds = array<i64: 32, 16>}, {transform_indices = @transform_7, window_bounds = array<i64: 8, 4>}]} {
    %c0 = arith.constant 0 : index
    %c0_0 = arith.constant 0 : index
    %c0_1 = arith.constant 0 : index
    %0 = vector.load %arg1[%c0, %c0_0, %c0_1] : memref<8x16x32xbf16, #tpu.memory_space<vmem>>, vector<8x16x32xbf16>
    %c0_2 = arith.constant 0 : index
    %c0_3 = arith.constant 0 : index
    %1 = vector.load %arg4[%c0_2, %c0_3] : memref<1x16xf32, #tpu.memory_space<vmem>>, vector<1x16xf32>
    %c0_4 = arith.constant 0 : index
    %c0_5 = arith.constant 0 : index
    %2 = vector.load %arg6[%c0_4, %c0_5] : memref<1x16xf32, #tpu.memory_space<vmem>>, vector<1x16xf32>
    %3 = vector.shape_cast %0 : vector<8x16x32xbf16> to vector<128x32xbf16>
    %c0_6 = arith.constant 0 : index
    %c0_7 = arith.constant 0 : index
    %4 = vector.load %arg3[%c0_6, %c0_7] : memref<32x32xbf16, #tpu.memory_space<vmem>>, vector<32x32xbf16>
    %cst = arith.constant dense<0.000000e+00> : vector<128x32xf32>
    %5 = tpu.matmul %3, %4, %cst {dimension_numbers = #tpu.dot_dimension_numbers<[1], [0], [0], [1], [0, 0, 1, 1], [], []>} : vector<128x32xbf16>, vector<32x32xbf16>, vector<128x32xf32> -> vector<128x32xf32>
    %6 = vector.shape_cast %5 : vector<128x32xf32> to vector<8x16x32xf32>
    %7 = vector.extract_strided_slice %6 {offsets = [0, 0, 0], sizes = [8, 8, 16], strides = [1, 1, 1]} : vector<8x16x32xf32> to vector<8x8x16xf32>
    %8 = math.tanh %7 : vector<8x8x16xf32>
    %9 = vector.extract_strided_slice %6 {offsets = [0, 8, 16], sizes = [8, 8, 16], strides = [1, 1, 1]} : vector<8x16x32xf32> to vector<8x8x16xf32>
    %10 = vector.extract_strided_slice %0 {offsets = [0, 0, 0], sizes = [8, 8, 32], strides = [1, 1, 1]} : vector<8x16x32xbf16> to vector<8x8x32xbf16>
    %11 = arith.extf %10 : vector<8x8x32xbf16> to vector<8x8x32xf32>
    %12 = vector.extract_strided_slice %0 {offsets = [0, 8, 0], sizes = [8, 8, 32], strides = [1, 1, 1]} : vector<8x16x32xbf16> to vector<8x8x32xbf16>
    %13 = arith.extf %12 : vector<8x8x32xbf16> to vector<8x8x32xf32>
    %14 = vector.shape_cast %1 : vector<1x16xf32> to vector<1x1x16xf32>
    %15 = vector.broadcast %14 : vector<1x1x16xf32> to vector<8x8x16xf32>
    %16 = arith.mulf %8, %15 : vector<8x8x16xf32>
    %cst_8 = arith.constant dense<0.000000e+00> : vector<8x8xf32>
    %17 = vector.multi_reduction <add>, %16, %cst_8 [2] : vector<8x8x16xf32> to vector<8x8xf32>
    %cst_9 = arith.constant dense<0xFF800000> : vector<8xf32>
    %18 = vector.multi_reduction <maximumf>, %17, %cst_9 [1] : vector<8x8xf32> to vector<8xf32>
    %19 = vector.shape_cast %18 : vector<8xf32> to vector<8x1xf32>
    %20 = vector.broadcast %19 : vector<8x1xf32> to vector<8x8xf32>
    %21 = arith.subf %17, %20 : vector<8x8xf32>
    %22 = math.exp %21 : vector<8x8xf32>
    %cst_10 = arith.constant dense<0.000000e+00> : vector<8xf32>
    %23 = vector.multi_reduction <add>, %22, %cst_10 [1] : vector<8x8xf32> to vector<8xf32>
    %24 = vector.shape_cast %23 : vector<8xf32> to vector<8x1xf32>
    %25 = tpu.reciprocal %24 {approx = true} : vector<8x1xf32> -> vector<8x1xf32>
    %26 = vector.broadcast %25 : vector<8x1xf32> to vector<8x8xf32>
    %27 = arith.mulf %22, %26 : vector<8x8xf32>
    %28 = vector.shape_cast %27 : vector<8x8xf32> to vector<8x8x1xf32>
    %29 = vector.broadcast %28 : vector<8x8x1xf32> to vector<8x8x32xf32>
    %30 = arith.mulf %29, %11 : vector<8x8x32xf32>
    %cst_11 = arith.constant dense<0.000000e+00> : vector<8x32xf32>
    %31 = vector.multi_reduction <add>, %30, %cst_11 [1] : vector<8x8x32xf32> to vector<8x32xf32>
    %c0_12 = arith.constant 0 : index
    %c0_13 = arith.constant 0 : index
    %32 = vector.load %arg5[%c0_12, %c0_13] : memref<32x16xf32, #tpu.memory_space<vmem>>, vector<32x16xf32>
    %cst_14 = arith.constant dense<0.000000e+00> : vector<8x16xf32>
    %33 = tpu.matmul %31, %32, %cst_14 {dimension_numbers = #tpu.dot_dimension_numbers<[1], [0], [0], [1], [0, 0, 1, 1], [], []>} : vector<8x32xf32>, vector<32x16xf32>, vector<8x16xf32> -> vector<8x16xf32>
    %34 = vector.shape_cast %33 : vector<8x16xf32> to vector<8x1x16xf32>
    %35 = vector.broadcast %34 : vector<8x1x16xf32> to vector<8x8x16xf32>
    %36 = arith.addf %9, %35 : vector<8x8x16xf32>
    %37 = vector.shape_cast %2 : vector<1x16xf32> to vector<1x1x16xf32>
    %38 = vector.broadcast %37 : vector<1x1x16xf32> to vector<8x8x16xf32>
    %39 = arith.mulf %36, %38 : vector<8x8x16xf32>
    %cst_15 = arith.constant dense<0.000000e+00> : vector<8x8xf32>
    %40 = vector.multi_reduction <add>, %39, %cst_15 [2] : vector<8x8x16xf32> to vector<8x8xf32>
    %cst_16 = arith.constant dense<0xFF800000> : vector<8xf32>
    %41 = vector.multi_reduction <maximumf>, %40, %cst_16 [1] : vector<8x8xf32> to vector<8xf32>
    %42 = vector.shape_cast %41 : vector<8xf32> to vector<8x1xf32>
    %43 = vector.broadcast %42 : vector<8x1xf32> to vector<8x8xf32>
    %44 = arith.subf %40, %43 : vector<8x8xf32>
    %45 = math.exp %44 : vector<8x8xf32>
    %cst_17 = arith.constant dense<0.000000e+00> : vector<8xf32>
    %46 = vector.multi_reduction <add>, %45, %cst_17 [1] : vector<8x8xf32> to vector<8xf32>
    %47 = vector.shape_cast %46 : vector<8xf32> to vector<8x1xf32>
    %48 = tpu.reciprocal %47 {approx = true} : vector<8x1xf32> -> vector<8x1xf32>
    %49 = vector.broadcast %48 : vector<8x1xf32> to vector<8x8xf32>
    %50 = arith.mulf %45, %49 : vector<8x8xf32>
    %51 = vector.shape_cast %50 : vector<8x8xf32> to vector<8x8x1xf32>
    %52 = vector.broadcast %51 : vector<8x8x1xf32> to vector<8x8x32xf32>
    %53 = arith.mulf %52, %13 : vector<8x8x32xf32>
    %cst_18 = arith.constant dense<0.000000e+00> : vector<8x32xf32>
    %54 = vector.multi_reduction <add>, %53, %cst_18 [1] : vector<8x8x32xf32> to vector<8x32xf32>
    %c0_19 = arith.constant 0 : index
    %c0_20 = arith.constant 0 : index
    %55 = vector.load %arg7[%c0_19, %c0_20] : memref<32x16xf32, #tpu.memory_space<vmem>>, vector<32x16xf32>
    %cst_21 = arith.constant dense<0.000000e+00> : vector<8x16xf32>
    %56 = tpu.matmul %54, %55, %cst_21 {dimension_numbers = #tpu.dot_dimension_numbers<[1], [0], [0], [1], [0, 0, 1, 1], [], []>} : vector<8x32xf32>, vector<32x16xf32>, vector<8x16xf32> -> vector<8x16xf32>
    %cst_22 = arith.constant 0.000000e+00 : f32
    %57 = vector.broadcast %cst_22 : f32 to vector<8x16xf32>
    %58 = arith.cmpf oge, %56, %57 : vector<8x16xf32>
    %cst_23 = arith.constant 0.00999999977 : f32
    %59 = vector.broadcast %cst_23 : f32 to vector<8x16xf32>
    %60 = arith.mulf %59, %56 : vector<8x16xf32>
    %61 = arith.select %58, %56, %60 : vector<8x16xi1>, vector<8x16xf32>
    %c0_24 = arith.constant 0 : index
    %c0_25 = arith.constant 0 : index
    %c0_26 = arith.constant 0 : index
    %62 = vector.load %arg2[%c0_24, %c0_25, %c0_26] : memref<8x4x16xbf16, #tpu.memory_space<vmem>>, vector<8x4x16xbf16>
    %63 = arith.extf %62 : vector<8x4x16xbf16> to vector<8x4x16xf32>
    %64 = vector.shape_cast %61 : vector<8x16xf32> to vector<8x1x16xf32>
    %65 = vector.broadcast %64 : vector<8x1x16xf32> to vector<8x4x16xf32>
    %66 = arith.mulf %63, %65 : vector<8x4x16xf32>
    %cst_27 = arith.constant dense<0.000000e+00> : vector<8x4xf32>
    %67 = vector.multi_reduction <add>, %66, %cst_27 [2] : vector<8x4x16xf32> to vector<8x4xf32>
    %cst_28 = arith.constant dense<0xFF800000> : vector<8xf32>
    %68 = vector.multi_reduction <maximumf>, %67, %cst_28 [1] : vector<8x4xf32> to vector<8xf32>
    %69 = vector.shape_cast %68 : vector<8xf32> to vector<8x1xf32>
    %70 = vector.broadcast %69 : vector<8x1xf32> to vector<8x4xf32>
    %71 = arith.subf %67, %70 : vector<8x4xf32>
    %72 = math.exp %71 : vector<8x4xf32>
    %cst_29 = arith.constant dense<0.000000e+00> : vector<8xf32>
    %73 = vector.multi_reduction <add>, %72, %cst_29 [1] : vector<8x4xf32> to vector<8xf32>
    %74 = vector.shape_cast %73 : vector<8xf32> to vector<8x1xf32>
    %75 = tpu.reciprocal %74 {approx = true} : vector<8x1xf32> -> vector<8x1xf32>
    %76 = vector.broadcast %75 : vector<8x1xf32> to vector<8x4xf32>
    %77 = arith.mulf %72, %76 : vector<8x4xf32>
    %c0_30 = arith.constant 0 : index
    %c0_31 = arith.constant 0 : index
    %78 = vector.load %arg8[%c0_30, %c0_31] : memref<8x4xf32, #tpu.memory_space<vmem>>, vector<8x4xf32>
    tpu.vector_store %arg8[%c0_30, %c0_31], %77 {strides = array<i32>} : memref<8x4xf32, #tpu.memory_space<vmem>>, vector<8x4xf32>,
    return
  }
  func.func @transform_0(%arg0: i32) -> (i32, i32, i32) {
    %c0_i32 = arith.constant 0 : i32
    %c0_i32_0 = arith.constant 0 : i32
    %c0_i32_1 = arith.constant 0 : i32
    return %arg0, %c0_i32, %c0_i32_0 : i32, i32, i32
  }
  func.func @transform_1(%arg0: i32) -> (i32, i32, i32) {
    %c0_i32 = arith.constant 0 : i32
    %c0_i32_0 = arith.constant 0 : i32
    %c0_i32_1 = arith.constant 0 : i32
    return %arg0, %c0_i32, %c0_i32_0 : i32, i32, i32
  }
  func.func @transform_2(%arg0: i32) -> (i32, i32) {
    %c0_i32 = arith.constant 0 : i32
    %c0_i32_0 = arith.constant 0 : i32
    %c0_i32_1 = arith.constant 0 : i32
    return %c0_i32, %c0_i32_0 : i32, i32
  }
  func.func @transform_3(%arg0: i32) -> (i32, i32) {
    %c0_i32 = arith.constant 0 : i32
    %c0_i32_0 = arith.constant 0 : i32
    %c0_i32_1 = arith.constant 0 : i32
    return %c0_i32, %c0_i32_0 : i32, i32
  }
  func.func @transform_4(%arg0: i32) -> (i32, i32) {
    %c0_i32 = arith.constant 0 : i32
    %c0_i32_0 = arith.constant 0 : i32
    %c0_i32_1 = arith.constant 0 : i32
    return %c0_i32, %c0_i32_0 : i32, i32
  }
  func.func @transform_5(%arg0: i32) -> (i32, i32) {
    %c0_i32 = arith.constant 0 : i32
    %c0_i32_0 = arith.constant 0 : i32
    %c0_i32_1 = arith.constant 0 : i32
    return %c0_i32, %c0_i32_0 : i32, i32
  }
  func.func @transform_6(%arg0: i32) -> (i32, i32) {
    %c0_i32 = arith.constant 0 : i32
    %c0_i32_0 = arith.constant 0 : i32
    %c0_i32_1 = arith.constant 0 : i32
    return %c0_i32, %c0_i32_0 : i32, i32
  }
  func.func @transform_7(%arg0: i32) -> (i32, i32) {
    %c0_i32 = arith.constant 0 : i32
    %c0_i32_0 = arith.constant 0 : i32
    return %arg0, %c0_i32 : i32, i32
  }
}

</mosaic_0001>

<bundles_post_ra>
// kernel: pred_layer_loss.1
= control target key start
LH: loop header
LB: loop body
LE: loop exit
PB: predicated region body
PF: predicated region fallthrough
CT: control target
= control target key end

     0   :  { %s2436_s24 = smov 0   ;;  %s2886_s0 = inlined_call_operand.vmem [shape: bf16[16,16,32], index: 0, kind: input, shape index: {}]   ;;  %s2887_s1 = inlined_call_operand.vmem [shape: bf16[16,4,16], index: 1, kind: input, shape index: {}]   ;;  %s2888_s2 = inlined_call_operand.vmem [shape: bf16[32,32], index: 2, kind: input, shape index: {}]   ;;  %s2889_s3 = inlined_call_operand.vmem [shape: f32[1,16], index: 3, kind: input, shape index: {}]   ;;  %s2890_s4 = inlined_call_operand.vmem [shape: f32[32,16], index: 4, kind: input, shape index: {}]   ;;  %s2891_s5 = inlined_call_operand.vmem [shape: f32[1,16], index: 5, kind: input, shape index: {}]   ;;  %s2892_s6 = inlined_call_operand.vmem [shape: f32[32,16], index: 6, kind: input, shape index: {}]   ;;  %s2893_s7 = inlined_call_operand.vmem [shape: f32[16,4], index: 7, kind: output, shape index: {}]  }
   0x1 LB: > { %s2442_s25 = sadd.s32 4294967295, %s2387_s24   ;;  %p2158_p0 = scmp.ge.s32.totalorder %s2387_s24, 1  ;;  %s2387_s24 = sphi %s2436_s24, %s17_s24  }
   0x2   : > { %p250_p1 = scmp.lt.s32.totalorder %s2387_s24, 3 }
   0x4   : > { %p251_p2 = pnand %p2158_p0, %p250_p1 }
   0x5   : > { %v2285_v0 = vld [vmem:[%s2888_s2] sm:$0xff] (!%p251_p2)   ;;  %s2159_s28 = sshll.u32 (!%p251_p2), %s2442_s25, 3  ;;  %v2286_v1 = vld [vmem:[%s2888_s2 + $0x8] sm:$0xff] (!%p251_p2)   ;;  %vm379_vm0 = vcmask (!%p251_p2), 261120   ;;  %vm539_vm1 = vcmask (!%p251_p2), 130048   ;;  %v572_v51 = vlaneseq (!%p251_p2)  ;;  %vm606_vm2 = vcmask (!%p251_p2), 1041409  }
   0x6   : > { %254 = sbr.rel (%p251_p2) target bundleno = 3324 (0xcfc), region = 48  ;;  %p288_p3 = scmp.lt.s32.totalorder (!%p251_p2), %s2159_s28, 15  ;;  %2210 = vmatprep.subr.bf16.mxu0 (!%p251_p2), %v2285_v0  ;;  %2264 = vmatprep.subr.bf16.mxu1 (!%p251_p2), %v2285_v0  ;;  %v2183_v20 = vld [vmem:[%s2889_s3] ss:$0 sm:$0xff] (!%p251_p2)  ;;  %vm608_vm3 = vcmask (!%p251_p2), 1042434   ;;  %vm610_vm4 = vcmask (!%p251_p2), 1043459  }
   0x7   : > { %2211 = vmatpush3.bf16.msra.mxu0 (!%p251_p2), %v2285_v0  ;;  %2266 = vmatpush3.bf16.msra.mxu1 (!%p251_p2), %v2285_v0  ;;  %v573_v53 = vand.u32 (!%p251_p2), 127, %v572_v51  ;;  %v2528_v54 = vshrl.u32 (!%p251_p2), %v572_v51, 7  ;;  %vm612_vm5 = vcmask (!%p251_p2), 1044484   ;;  %vm614_vm6 = vcmask (!%p251_p2), 1045509   ;;  %s2393_s26 = smov (!%p251_p2), 16   ;;  %s2395_s27 = smov (!%p251_p2), 112  }
   0x8   : > { %2212 = vmatprep.subr.bf16.mxu0 (!%p251_p2), %v2286_v1  ;;  %2265 = vmatprep.subr.bf16.mxu1 (!%p251_p2), %v2286_v1  ;;  %vm616_vm7 = vcmask (!%p251_p2), 1046534   ;;  %vm618_vm8 = vcmask (!%p251_p2), 1047559   ;;  %vm621_vm9 = vcmask (!%p251_p2), 64512   ;;  %vm2391_vm10 = vmmov (!%p251_p2), 0   ;;  %p300_p4 = scmp.lt.s32.totalorder (!%p251_p2), %s2442_s25, 1 }
   0x9   : > { %v2531_v57 = vsub.s32 (!%p251_p2), %v573_v53, %v2528_v54  ;;  %v2573_v51 = vsub.s32 (!%p251_p2), 6, %v2528_v54  ;;  %vm1749_vm12 = vcmask (!%p251_p2), 125952   ;;  %vm1822_vm13 = vcmask (!%p251_p2), 31744  }
   0xb   : > { %2213 = vmatpush3.bf16.msra.mxu0 (!%p251_p2), %v2286_v1  ;;  %2267 = vmatpush3.bf16.msra.mxu1 (!%p251_p2), %v2286_v1 }
   0xd   : > { %s2895_s28 = smov (!%p288_p3, %s2159_s28), 15  ;;  %s2897_s25 = smov (!%p300_p4, %s2442_s25), 1 }
   0xe   : > { %s2189_s8 = sshll.u32 %s2895_s28, 3 }
   0xf   : > { %s2459_s11 = scalar_lea.vmem %s2886_s0, %s2189_s8 }
  0x10   : > { %v2462_v2 = vld [vmem:[%s2459_s11] sm:$0xff]   ;;  %v2465_v3 = vld [vmem:[%s2459_s11 + $0x8] sm:$0xff]   ;;  %v2468_v4 = vld [vmem:[%s2459_s11 + $0x10] sm:$0xff]  }
  0x11   : > { %v2471_v5 = vld [vmem:[%s2459_s11 + $0x30] sm:$0xff]   ;;  %v2474_v6 = vld [vmem:[%s2459_s11 + $0x38] sm:$0xff]   ;;  %2214 = vmatprep.mubr.msk.bf16.mxu0 %vm379_vm0, %v2462_v2  ;;  %v2488_v8 = vld [vmem:[%s2459_s11 + $0x20] sm:$0xff]  }
  0x12   : > { %2215 = vmatmul.mubr.msk.bf16.vlgmr.msra.gmra.mrb[0].mxu0 %vm379_vm0, %v2465_v3  ;;  %v2483_v7 = vld [vmem:[%s2459_s11 + $0x18] sm:$0xff]   ;;  %2226 = vmatprep.mubr.msk.bf16.mxu1 %vm379_vm0, %v2471_v5  ;;  %v2497_v9 = vld [vmem:[%s2459_s11 + $0x28] sm:$0xff]  }
  0x13   : > { %2218 = vmatprep.mubr.msk.bf16.mxu0 %vm379_vm0, %v2468_v4  ;;  %2227 = vmatmul.mubr.msk.bf16.vlgmr.msra.gmra.mrb[0].mxu1 %vm379_vm0, %v2474_v6 }
  0x1a   : > { %2219 = vmatmul.mubr.msk.bf16.gmra.mrb[4].mxu0 %vm379_vm0, %v2483_v7 }
  0x1b   : > { %2222 = vmatprep.mubr.msk.bf16.mxu0 %vm379_vm0, %v2488_v8 }
  0x22   : > { %2223 = vmatmul.mubr.msk.bf16.gmra.mrb[8].mxu0 %vm379_vm0, %v2497_v9 }
  0xe5   : > { %v2216_v10 = vpop.f32.mrb[0].mxu0 }
  0xe6   : > { %2303 = vtanh.f32 %v2216_v10  ;;  %v438_v11 = vpop.f32.mrb[1].mxu0  ;;  %v2228_v13 = vpop.f32.mrb[0].mxu1 }
  0xe7   : > { %2305 = vtanh.f32 %v438_v11  ;;  %v2501_v12 = vpop.f32.mrb[2].mxu0  ;;  %v486_v15 = vpop.f32.mrb[1].mxu1 }
  0xe8   : > { %v2503_v14 = vpop.f32.mrb[3].mxu0  ;;  %v2505_v16 = vpop.f32.mrb[2].mxu1 }
  0xe9   : > { %v2507_v17 = vpop.f32.mrb[3].mxu1 }
  0xed   : > { %v2220_v18 = vpop.f32.mrb[4].mxu0 }
  0xee   : > { %2307 = vtanh.f32 %v2220_v18  ;;  %v454_v19 = vpop.f32.mrb[5].mxu0 }
  0xef   : > { %2309 = vtanh.f32 %v454_v19  ;;  %v2512_v21 = vpop.f32.mrb[6].mxu0 }
  0xf0   : > { %v2304_v22 = vpop.eup %2303  ;;  %v2514_v23 = vpop.f32.mrb[7].mxu0  ;;  %2311 = vtanh.f32 %v2228_v13 }
  0xf1   : > { %v2306_v24 = vpop.eup %2305  ;;  %v532_v25 = vmul.f32 %v2304_v22, %v2183_v20  ;;  %2313 = vtanh.f32 %v486_v15 }
  0xf2   : > { %v531_v27 = vmul.f32 %v2306_v24, %v2183_v20 }
  0xf3   : > { %v543_v26 = vsel %vm539_vm1, %v532_v25, 0.0 }
  0xf4   : > { %544 = vadd.xlane.f32.xlu0 %v543_v26  ;;  %v540_v31 = vsel %vm539_vm1, %v531_v27, 0.0 }
  0xf5   : > { %v2224_v28 = vpop.f32.mrb[8].mxu0 }
  0xf6   : > { %2315 = vtanh.f32 %v2224_v28  ;;  %v470_v29 = vpop.f32.mrb[9].mxu0 }
  0xf7   : > { %2317 = vtanh.f32 %v470_v29  ;;  %v2517_v30 = vpop.f32.mrb[10].mxu0  ;;  %v2389_v29 = vmov 0  }
  0xf8   : > { %v2308_v32 = vpop.eup %2307  ;;  %541 = vadd.xlane.f32.xlu0 %v540_v31  ;;  %v2520_v33 = vpop.f32.mrb[11].mxu0  ;;  %2283 = vset.pattern.permute.xlu1 %v2389_v29  ;;  %v2550_v31 = vsub.s32 0, %v2528_v54 }
  0xf9   : > { %v2310_v34 = vpop.eup %2309  ;;  %v534_v35 = vmul.f32 %v2308_v32, %v2183_v20  ;;  %2284 = vset.pattern.permute.xlu0 %v2389_v29  ;;  %v2553_v32 = vsub.s32 1, %v2528_v54 }
  0xfa   : > { %v533_v37 = vmul.f32 %v2310_v34, %v2183_v20  ;;  %v2312_v38 = vpop.eup %2311  ;;  %v2556_v34 = vsub.s32 2, %v2528_v54 }
  0xfb   : > { %v549_v36 = vsel %vm539_vm1, %v534_v35, 0.0  ;;  %v2314_v39 = vpop.eup %2313  ;;  %v538_v44 = vmul.f32 %v2312_v38, %v2183_v20  ;;  %v2559_v35 = vsub.s32 3, %v2528_v54 }
  0xfc   : > { %550 = vadd.xlane.f32.xlu1 %v549_v36  ;;  %v546_v40 = vsel %vm539_vm1, %v533_v37, 0.0  ;;  %v537_v46 = vmul.f32 %v2314_v39, %v2183_v20 }
  0xfd   : > { %v561_v49 = vsel %vm539_vm1, %v538_v44, 0.0 }
  0xfe   : > { %v558_v50 = vsel %vm539_vm1, %v537_v46, 0.0 }
 0x100   : > { %v2316_v41 = vpop.eup %2315  ;;  %547 = vadd.xlane.f32.xlu1 %v546_v40  ;;  %v2565_v40 = vsub.s32 4, %v2528_v54 }
 0x101   : > { %v2318_v42 = vpop.eup %2317  ;;  %v536_v43 = vmul.f32 %v2316_v41, %v2183_v20 }
 0x102   : > { %v535_v45 = vmul.f32 %v2318_v42, %v2183_v20 }
 0x103   : > { %v555_v47 = vsel %vm539_vm1, %v536_v43, 0.0 }
 0x104   : > { %556 = vadd.xlane.f32.xlu1 %v555_v47  ;;  %v552_v48 = vsel %vm539_vm1, %v535_v45, 0.0  ;;  %v2569_v47 = vsub.s32 5, %v2528_v54 }
 0x105   : > { %553 = vadd.xlane.f32.xlu0 %v552_v48 }
 0x108   : > { %562 = vadd.xlane.f32.xlu1 %v561_v49 }
 0x109   : > { %559 = vadd.xlane.f32.xlu0 %v558_v50 }
 0x181   : > { %v545_v52 = vpop.xlane.xlu0 %544 }
 0x182   : > { %v581_v60 = vrot.slane %v545_v52, %v2531_v57 }
 0x185   : > { %v542_v55 = vpop.xlane.xlu0 %541 }
 0x186   : > { %v577_v58 = vrot.slane %v542_v55, %v2531_v57 }
 0x188   : > { %v607_v62 = vsel %vm606_vm2, %v581_v60, %v577_v58 }
 0x189   : > { %v551_v56 = vpop.xlane.xlu1 %550 }
 0x18a   : > { %v589_v1 = vrot.slane %v551_v56, %v2531_v57 }
 0x18d   : > { %v548_v59 = vpop.xlane.xlu1 %547 }
 0x18e   : > { %v585_v61 = vrot.slane %v548_v59, %v2531_v57 }
 0x190   : > { %v609_v63 = vsel %vm608_vm3, %v585_v61, %v607_v62 }
 0x191   : > { %v557_v0 = vpop.xlane.xlu1 %556  ;;  %v611_v13 = vsel %vm610_vm4, %v589_v1, %v609_v63 }
 0x192   : > { %v554_v10 = vpop.xlane.xlu0 %553  ;;  %v597_v19 = vrot.slane %v557_v0, %v2531_v57 }
 0x193   : > { %v593_v11 = vrot.slane %v554_v10, %v2531_v57 }
 0x195   : > { %v613_v15 = vsel %vm612_vm5, %v593_v11, %v611_v13  ;;  %v563_v18 = vpop.xlane.xlu1 %562 }
 0x196   : > { %v560_v20 = vpop.xlane.xlu0 %559  ;;  %v605_v24 = vrot.slane %v563_v18, %v2531_v57  ;;  %v615_v25 = vsel %vm614_vm6, %v597_v19, %v613_v15 }
 0x197   : > { %v601_v22 = vrot.slane %v560_v20, %v2531_v57 }
 0x199   : > { %v617_v26 = vsel %vm616_vm7, %v601_v22, %v615_v25 }
 0x19a   : > { %v619_v27 = vsel %vm618_vm8, %v605_v24, %v617_v26 }
 0x19b   : > { %v622_v28 = vsel %vm621_vm9, %v619_v27, -inf }
 0x19c   : > { %623 = vmax.xlane.f32.xlu0 %v622_v28 }
 0x229   : > { %v624_v36 = vpop.xlane.xlu0 %623 }
 0x22a   : > { %v629_v37 = vrot.slane %v624_v36, %v2550_v31  ;;  %v633_v38 = vrot.slane %v624_v36, %v2553_v32  ;;  %v637_v39 = vrot.slane %v624_v36, %v2556_v34  ;;  %v641_v41 = vrot.slane %v624_v36, %v2559_v35 }
 0x22b   : > { %v645_v48 = vrot.slane %v624_v36, %v2565_v40  ;;  %v649_v53 = vrot.slane %v624_v36, %v2569_v47 }
 0x22c   : > { %v666_v42 = vsub.f32 %v542_v55, %v629_v37  ;;  %v667_v43 = vsub.f32 %v545_v52, %v633_v38  ;;  %v668_v44 = vsub.f32 %v548_v59, %v637_v39  ;;  %v669_v49 = vsub.f32 %v551_v56, %v641_v41 }
 0x22d   : > { %v670_v58 = vsub.f32 %v554_v10, %v645_v48  ;;  %v2577_v55 = vsub.s32 7, %v2528_v54  ;;  %v653_v59 = vrot.slane %v624_v36, %v2573_v51  ;;  %v671_v60 = vsub.f32 %v557_v0, %v649_v53 }
 0x22e   : > { %v674_v45 = vmul.f32 1.442695, %v666_v42  ;;  %v676_v46 = vmul.f32 1.442695, %v667_v43  ;;  %v678_v50 = vmul.f32 1.442695, %v668_v44 }
 0x22f   : > { %v680_v52 = vmul.f32 1.442695, %v669_v49  ;;  %v682_v61 = vmul.f32 1.442695, %v670_v58  ;;  %v657_v63 = vrot.slane %v624_v36, %v2577_v55  ;;  %v672_v1 = vsub.f32 %v560_v20, %v653_v59 }
 0x230   : > { %2319 = vpow2.f32 %v674_v45  ;;  %v684_v11 = vmul.f32 1.442695, %v671_v60 }
 0x231   : > { %2321 = vpow2.f32 %v676_v46  ;;  %v673_v13 = vsub.f32 %v563_v18, %v657_v63  ;;  %v686_v15 = vmul.f32 1.442695, %v672_v1 }
 0x232   : > { %2323 = vpow2.f32 %v678_v50 }
 0x233   : > { %2325 = vpow2.f32 %v680_v52  ;;  %v688_v0 = vmul.f32 1.442695, %v673_v13 }
 0x234   : > { %2327 = vpow2.f32 %v682_v61 }
 0x235   : > { %2329 = vpow2.f32 %v684_v11 }
 0x236   : > { %2331 = vpow2.f32 %v686_v15 }
 0x237   : > { %2333 = vpow2.f32 %v688_v0 }
 0x23a   : > { %v2320_v56 = vpop.eup %2319 }
 0x23b   : > { %v2322_v62 = vpop.eup %2321  ;;  %699 = vperm.xlu1 %2283, %v2320_v56  }
 0x23c   : > { %702 = vperm.xlu0 %2284, %v2322_v62   ;;  %v2324_v10 = vpop.eup %2323 }
 0x23d   : > { %v2326_v19 = vpop.eup %2325 }
 0x23e   : > { %v2328_v22 = vpop.eup %2327 }
 0x23f   : > { %705 = vperm.xlu1 %2283, %v2324_v10   ;;  %v2330_v24 = vpop.eup %2329 }
 0x240   : > { %v2332_v25 = vpop.eup %2331 }
 0x241   : > { %v2334_v20 = vpop.eup %2333 }
 0x243   : > { %708 = vperm.xlu1 %2283, %v2326_v19  }
 0x247   : > { %711 = vperm.xlu1 %2283, %v2328_v22  }
 0x24b   : > { %714 = vperm.xlu1 %2283, %v2330_v24  }
 0x24f   : > { %717 = vperm.xlu1 %2283, %v2332_v25  }
 0x253   : > { %720 = vperm.xlu1 %2283, %v2334_v20  }
 0x2ba   : > { %v700_v26 = vpop.permute.xlu1 %699 }
 0x2bb   : > { %v703_v18 = vpop.permute.xlu0 %702  ;;  %v725_v38 = vrot.slane %v700_v26, %v2531_v57 }
 0x2bc   : > { %v729_v37 = vrot.slane %v703_v18, %v2531_v57 }
 0x2be   : > { %v706_v27 = vpop.permute.xlu1 %705  ;;  %v754_v44 = vsel %vm606_vm2, %v729_v37, %v725_v38 }
 0x2bf   : > { %v733_v39 = vrot.slane %v706_v27, %v2531_v57 }
 0x2c1   : > { %v755_v46 = vsel %vm608_vm3, %v733_v39, %v754_v44 }
 0x2c2   : > { %v709_v28 = vpop.permute.xlu1 %708 }
 0x2c3   : > { %v737_v41 = vrot.slane %v709_v28, %v2531_v57 }
 0x2c5   : > { %v756_v49 = vsel %vm610_vm4, %v737_v41, %v755_v46  ;;  %v2390_v41 = vmov 0.0|0.0  }
 0x2c6   : > { %v712_v29 = vpop.permute.xlu1 %711  ;;  %2252 = vmatprep.subr.bf16.mxu1 %v2390_v41 }
 0x2c7   : > { %v741_v42 = vrot.slane %v712_v29, %v2531_v57 }
 0x2c9   : > { %v757_v50 = vsel %vm612_vm5, %v741_v42, %v756_v49  ;;  %v2392_v42 = vmov 0.0   ;;  %v511_v49 = vunpack.c.l.bf16 %v2468_v4 }
 0x2ca   : > { %v715_v36 = vpop.permute.xlu1 %714  ;;  %2238 = vmatprep.mubr.msk.f32.mxu1 %vm2391_vm10, %v2392_v42 }
 0x2cb   : > { %v745_v45 = vrot.slane %v715_v36, %v2531_v57 }
 0x2cd   : > { %v758_v58 = vsel %vm614_vm6, %v745_v45, %v757_v50  ;;  %v510_v45 = vunpack.c.l.bf16 %v2465_v3  ;;  %v513_v3 = vunpack.c.l.bf16 %v2488_v8  ;;  %v515_v8 = vunpack.c.l.bf16 %v2471_v5 }
 0x2ce   : > { %v718_v43 = vpop.permute.xlu1 %717 }
 0x2cf   : > { %v749_v48 = vrot.slane %v718_v43, %v2531_v57 }
 0x2d1   : > { %v759_v59 = vsel %vm616_vm7, %v749_v48, %v758_v58  ;;  %v509_v48 = vunpack.c.l.bf16 %v2462_v2 }
 0x2d2   : > { %v721_v53 = vpop.permute.xlu1 %720 }
 0x2d3   : > { %v753_v52 = vrot.slane %v721_v53, %v2531_v57 }
 0x2d5   : > { %v760_v60 = vsel %vm618_vm8, %v753_v52, %v759_v59  ;;  %v512_v59 = vunpack.c.l.bf16 %v2483_v7  ;;  %v514_v7 = vunpack.c.l.bf16 %v2497_v9 }
 0x2d6   : > { %v762_v61 = vsel %vm621_vm9, %v760_v60, 0.0 }
 0x2d7   : > { %763 = vadd.xlane.f32.xlu1 %v762_v61 }
 0x364   : > { %v764_v63 = vpop.xlane.xlu1 %763 }
 0x365   : > { %2335 = vrcp.f32 %v764_v63 }
 0x36f   : > { %v2336_v1 = vpop.eup %2335 }
 0x370   : > { %v770_v11 = vrot.slane %v2336_v1, %v2550_v31  ;;  %v774_v15 = vrot.slane %v2336_v1, %v2553_v32  ;;  %v778_v26 = vrot.slane %v2336_v1, %v2556_v34  ;;  %v782_v28 = vrot.slane %v2336_v1, %v2559_v35 }
 0x371   : > { %v786_v18 = vrot.slane %v2336_v1, %v2565_v40  ;;  %v790_v37 = vrot.slane %v2336_v1, %v2569_v47  ;;  %v794_v38 = vrot.slane %v2336_v1, %v2573_v51  ;;  %v798_v39 = vrot.slane %v2336_v1, %v2577_v55 }
 0x372   : > { %v807_v13 = vmul.f32 %v2320_v56, %v770_v11  ;;  %v808_v0 = vmul.f32 %v2322_v62, %v774_v15  ;;  %v809_v27 = vmul.f32 %v2324_v10, %v778_v26  ;;  %v810_v29 = vmul.f32 %v2326_v19, %v782_v28  ;;  %v919_v19 = vld [vmem:[%s2890_s4] sm:$0xff] }
 0x373   : > { %v811_v36 = vmul.f32 %v2328_v22, %v786_v18  ;;  %v812_v56 = vmul.f32 %v2330_v24, %v790_v37  ;;  %v813_v62 = vmul.f32 %v2332_v25, %v794_v38  ;;  %v814_v10 = vmul.f32 %v2334_v20, %v798_v39  ;;  %v920_v22 = vld [vmem:[%s2890_s4 + $0x8] sm:$0xff]  ;;  %v921_v24 = vld [vmem:[%s2890_s4 + $0x10] sm:$0xff]  ;;  %v922_v20 = vld [vmem:[%s2890_s4 + $0x18] sm:$0xff] }
 0x374   : > { %817 = vperm.xlu0 %2284, %v807_v13   ;;  %v2253_v25 = vpack.c.bf16 %v920_v22, %v919_v19  ;;  %v2256_v43 = vpack.c.bf16 %v922_v20, %v921_v24 }
 0x376   : > { %2254 = vmatpush3.bf16.msra.mxu1 %v2253_v25 }
 0x377   : > { %2255 = vmatprep.subr.bf16.mxu1 %v2390_v41 }
 0x378   : > { %822 = vperm.xlu0 %2284, %v808_v0  }
 0x37a   : > { %2257 = vmatpush3.bf16.msra.mxu1 %v2256_v43 }
 0x37b   : > { %2258 = vmatprep.subr.bf16.mxu1 %v2390_v41 }
 0x37c   : > { %827 = vperm.xlu0 %2284, %v809_v27  }
 0x380   : > { %832 = vperm.xlu0 %2284, %v810_v29  }
 0x384   : > { %837 = vperm.xlu0 %2284, %v811_v36  }
 0x388   : > { %842 = vperm.xlu0 %2284, %v812_v56  }
 0x38c   : > { %847 = vperm.xlu0 %2284, %v813_v62  }
 0x390   : > { %852 = vperm.xlu0 %2284, %v814_v10  }
 0x3f3   : > { %v818_v44 = vpop.permute.xlu0 %817 }
 0x3f4   : > { %v855_v58 = vmul.f32 %v818_v44, %v509_v48 }
 0x3f6   : > { %v863_v1 = vsel %vm379_vm0, %v855_v58, 0.0 }
 0x3f7   : > { %v823_v46 = vpop.permute.xlu0 %822  ;;  %v864_v15 = vrot.slane %v863_v1, 4 }
 0x3f8   : > { %v856_v50 = vmul.f32 %v823_v46, %v510_v45  ;;  %v516_v45 = vunpack.c.l.bf16 %v2474_v6 }
 0x3f9   : > { %v865_v36 = vadd.f32 %v864_v15, %v863_v1 }
 0x3fa   : > { %v870_v60 = vsel %vm379_vm0, %v856_v50, 0.0 }
 0x3fb   : > { %v828_v53 = vpop.permute.xlu0 %827  ;;  %v871_v13 = vrot.slane %v870_v60, 4  ;;  %v866_v24 = vrot.slane %v865_v36, 2 }
 0x3fc   : > { %v857_v52 = vmul.f32 %v828_v53, %v511_v49 }
 0x3fd   : > { %v872_v28 = vadd.f32 %v871_v13, %v870_v60  ;;  %v867_v53 = vadd.f32 %v866_v24, %v865_v36 }
 0x3fe   : > { %v877_v61 = vsel %vm379_vm0, %v857_v52, 0.0 }
 0x3ff   : > { %v833_v63 = vpop.permute.xlu0 %832  ;;  %v878_v2 = vrot.slane %v877_v61, 4  ;;  %v873_v39 = vrot.slane %v872_v28, 2 }
 0x400   : > { %v858_v11 = vmul.f32 %v833_v63, %v512_v59 }
 0x401   : > { %v879_v29 = vadd.f32 %v878_v2, %v877_v61  ;;  %v874_v46 = vadd.f32 %v873_v39, %v872_v28  ;;  %v868_v2 = vrot.slane %v867_v53, 1 }
 0x402   : > { %v884_v4 = vsel %vm379_vm0, %v858_v11, 0.0 }
 0x403   : > { %v885_v0 = vrot.slane %v884_v4, 4  ;;  %v838_v26 = vpop.permute.xlu0 %837  ;;  %v880_v19 = vrot.slane %v879_v29, 2  ;;  %v875_v63 = vrot.slane %v874_v46, 1 }
 0x404   : > { %v859_v27 = vmul.f32 %v838_v26, %v513_v3 }
 0x405   : > { %v886_v37 = vadd.f32 %v885_v0, %v884_v4  ;;  %v881_v49 = vadd.f32 %v880_v19, %v879_v29  ;;  %v876_v26 = vadd.f32 %v875_v63, %v874_v46  ;;  %v2394_v46 = vmov 1966171168  }
 0x406   : > { %v891_v18 = vsel %vm379_vm0, %v859_v27, 0.0 }
 0x407   : > { %v892_v56 = vrot.slane %v891_v18, 4  ;;  %v843_v38 = vpop.permute.xlu0 %842  ;;  %v887_v25 = vrot.slane %v886_v37, 2  ;;  %v882_v3 = vrot.slane %v881_v49, 1 }
 0x408   : > { %v860_v62 = vmul.f32 %v843_v38, %v514_v7 }
 0x409   : > { %v893_v10 = vadd.f32 %v892_v56, %v891_v18  ;;  %v888_v5 = vadd.f32 %v887_v25, %v886_v37  ;;  %v883_v29 = vadd.f32 %v882_v3, %v881_v49  ;;  %v869_v18 = vadd.f32 %v868_v2, %v867_v53 }
 0x40a   : > { %v898_v22 = vsel %vm379_vm0, %v860_v62, 0.0 }
 0x40b   : > { %v899_v20 = vrot.slane %v898_v22, 4  ;;  %v848_v9 = vpop.permute.xlu0 %847  ;;  %v894_v43 = vrot.slane %v893_v10, 2  ;;  %v889_v6 = vrot.slane %v888_v5, 1  ;;  %v931_v62 = vsel %vm606_vm2, %v876_v26, %v869_v18 }
 0x40c   : > { %v861_v44 = vmul.f32 %v848_v9, %v515_v8 }
 0x40d   : > { %v900_v48 = vadd.f32 %v899_v20, %v898_v22  ;;  %v895_v60 = vadd.f32 %v894_v43, %v893_v10  ;;  %v890_v36 = vadd.f32 %v889_v6, %v888_v5  ;;  %v932_v10 = vsel %vm608_vm3, %v883_v29, %v931_v62 }
 0x40e   : > { %v905_v50 = vsel %vm379_vm0, %v861_v44, 0.0 }
 0x40f   : > { %v901_v58 = vrot.slane %v900_v48, 2  ;;  %v906_v52 = vrot.slane %v905_v50, 4  ;;  %v853_v59 = vpop.permute.xlu0 %852  ;;  %v896_v0 = vrot.slane %v895_v60, 1  ;;  %v933_v22 = vsel %vm610_vm4, %v890_v36, %v932_v10 }
 0x410   : > { %v862_v61 = vmul.f32 %v853_v59, %v516_v45  ;;  %v2185_v45 = vld [vmem:[%s2891_s5] ss:$0 sm:$0xff] }
 0x411   : > { %v902_v1 = vadd.f32 %v901_v58, %v900_v48  ;;  %v907_v11 = vadd.f32 %v906_v52, %v905_v50  ;;  %v897_v38 = vadd.f32 %v896_v0, %v895_v60  ;;  %1129 = vrot.lane.b32.xlu0 %v2185_v45, %s2393_s26  ;;  %v1013_v48 = vunpack.c.l.s4 %v2394_v46 }
 0x412   : > { %v912_v13 = vsel %vm379_vm0, %v862_v61, 0.0 }
 0x413   : > { %v908_v4 = vrot.slane %v907_v11, 2  ;;  %v913_v15 = vrot.slane %v912_v13, 4  ;;  %v903_v27 = vrot.slane %v902_v1, 1  ;;  %v934_v25 = vsel %vm612_vm5, %v897_v38, %v933_v22 }
 0x414   : > { %v1014_v49 = vunpack.c.0.s8 %v1013_v48 }
 0x415   : > { %v909_v7 = vadd.f32 %v908_v4, %v907_v11  ;;  %v914_v28 = vadd.f32 %v913_v15, %v912_v13  ;;  %v904_v8 = vadd.f32 %v903_v27, %v902_v1 }
 0x416   : > { %v2653_v50 = vsub.s32 %v1014_v49, %v2528_v54 }
 0x417   : > { %v910_v37 = vrot.slane %v909_v7, 1  ;;  %v915_v56 = vrot.slane %v914_v28, 2  ;;  %v935_v9 = vsel %vm614_vm6, %v904_v8, %v934_v25 }
 0x419   : > { %v916_v39 = vadd.f32 %v915_v56, %v914_v28  ;;  %v911_v19 = vadd.f32 %v910_v37, %v909_v7 }
 0x41b   : > { %v917_v24 = vrot.slane %v916_v39, 1  ;;  %v936_v43 = vsel %vm616_vm7, %v911_v19, %v935_v9 }
 0x41d   : > { %v918_v20 = vadd.f32 %v917_v24, %v916_v39 }
 0x41f   : > { %v937_v44 = vsel %vm618_vm8, %v918_v20, %v936_v43 }
 0x420   : > { %2239 = vmatmul.mubr.msk.f32.vlgmr.msra.gmra.mrb[4].mxu1 %vm379_vm0, %v937_v44 }
 0x421   : > { %2249 = vmatprep.mubr.msk.f32.mxu1 %vm2391_vm10, %v2392_v42 }
 0x483   : > { %v1130_v29 = vpop.permute.xlu0 %1129 }
 0x4f3   : > { %v1006_v53 = vpop.f32.mrb[4].mxu1 }
 0x4f4   : > { %v1011_v5 = vcombine.high %v1006_v53, %v1006_v53  ;;  %v1018_v58 = vrot.slane %v1006_v53, %v2653_v50  ;;  %v2240_v52 = vpop.f32.mrb[5].mxu1 }
 0x4f6   : > { %v1025_v42 = vrot.slane %v1011_v5, %v2653_v50  ;;  %v1026_v59 = vcombine.high %v1018_v58, %v1018_v58  ;;  %v1034_v60 = vrot.slane %v1018_v58, %v2653_v50 }
 0x4f8   : > { %v1048_v61 = vrot.slane %v1026_v59, %v2653_v50  ;;  %v1041_v63 = vrot.slane %v1025_v42, %v2653_v50  ;;  %v1063_v1 = vrot.slane %v1034_v60, %v2550_v31  ;;  %v1056_v11 = vcombine.high %v1034_v60, %v1034_v60 }
 0x4f9   : > { %v1027_v2 = vcombine.high %v1025_v42, %v1025_v42 }
 0x4fa   : > { %v1067_v54 = vrot.slane %v1048_v61, %v2550_v31  ;;  %1092 = vrot.lane.b32.xlu1 %v1063_v1, %s2393_s26  ;;  %v1079_v3 = vrot.slane %v1041_v63, %v2550_v31  ;;  %v1057_v13 = vcombine.high %v1041_v63, %v1041_v63  ;;  %v1071_v6 = vrot.slane %v1056_v11, %v2550_v31 }
 0x4fb   : > { %v1058_v4 = vcombine.high %v1048_v61, %v1048_v61  ;;  %v1055_v26 = vrot.slane %v1027_v2, %v2653_v50 }
 0x4fc   : > { %1094 = vrot.lane.b32.xlu0 %v1067_v54, %s2393_s26  ;;  %v1087_v15 = vrot.slane %v1057_v13, %v2550_v31 }
 0x4fd   : > { %v1075_v0 = vrot.slane %v1058_v4, %v2550_v31  ;;  %v1083_v27 = vrot.slane %v1055_v26, %v2550_v31  ;;  %v1059_v7 = vcombine.high %v1055_v26, %v1055_v26 }
 0x4fe   : > { %1100 = vrot.lane.b32.xlu1 %v1079_v3, %s2393_s26 }
 0x4ff   : > { %v1091_v28 = vrot.slane %v1059_v7, %v2550_v31 }
 0x500   : > { %1096 = vrot.lane.b32.xlu0 %v1071_v6, %s2393_s26 }
 0x502   : > { %1104 = vrot.lane.b32.xlu1 %v1087_v15, %s2393_s26 }
 0x504   : > { %1098 = vrot.lane.b32.xlu0 %v1075_v0, %s2393_s26 }
 0x508   : > { %1102 = vrot.lane.b32.xlu0 %v1083_v27, %s2393_s26 }
 0x50c   : > { %1106 = vrot.lane.b32.xlu0 %v1091_v28, %s2393_s26 }
 0x56c   : > { %v1093_v18 = vpop.permute.xlu1 %1092 }
 0x56d   : > { %v1116_v36 = vadd.f32 %v1093_v18, %v2503_v14 }
 0x56e   : > { %v1095_v37 = vpop.permute.xlu0 %1094 }
 0x56f   : > { %v1117_v56 = vadd.f32 %v2501_v12, %v1095_v37  ;;  %v1132_v38 = vmul.f32 %v1130_v29, %v1116_v36 }
 0x570   : > { %v1101_v8 = vpop.permute.xlu1 %1100 }
 0x571   : > { %v1133_v62 = vmul.f32 %v1130_v29, %v1117_v56  ;;  %1148 = vrot.lane.b32.xlu1 %v1132_v38, %s2395_s27  ;;  %v1120_v19 = vadd.f32 %v1101_v8, %v2520_v33 }
 0x572   : > { %v1097_v39 = vpop.permute.xlu0 %1096 }
 0x573   : > { %v1118_v10 = vadd.f32 %v1097_v39, %v2514_v23  ;;  %1150 = vrot.lane.b32.xlu0 %v1133_v62, %s2395_s27  ;;  %v1136_v14 = vmul.f32 %v1130_v29, %v1120_v19 }
 0x574   : > { %v1105_v24 = vpop.permute.xlu1 %1104 }
 0x575   : > { %v1134_v22 = vmul.f32 %v1130_v29, %v1118_v10  ;;  %v1122_v12 = vadd.f32 %v1105_v24, %v2507_v17 }
 0x576   : > { %v1099_v25 = vpop.permute.xlu0 %1098 }
 0x577   : > { %v1119_v20 = vadd.f32 %v2512_v21, %v1099_v25  ;;  %1152 = vrot.lane.b32.xlu1 %v1134_v22, %s2395_s27  ;;  %v1138_v45 = vmul.f32 %v1130_v29, %v1122_v12 }
 0x579   : > { %v1135_v9 = vmul.f32 %v1130_v29, %v1119_v20 }
 0x57a   : > { %v1103_v43 = vpop.permute.xlu0 %1102 }
 0x57b   : > { %v1121_v44 = vadd.f32 %v2517_v30, %v1103_v43  ;;  %1154 = vrot.lane.b32.xlu0 %v1135_v9, %s2395_s27  ;;  %1156 = vrot.lane.b32.xlu1 %v1136_v14, %s2395_s27 }
 0x57d   : > { %v1137_v23 = vmul.f32 %v1130_v29, %v1121_v44 }
 0x57e   : > { %v1107_v46 = vpop.permute.xlu0 %1106 }
 0x57f   : > { %v1123_v33 = vadd.f32 %v2505_v16, %v1107_v46  ;;  %1158 = vrot.lane.b32.xlu0 %v1137_v23, %s2395_s27  ;;  %1160 = vrot.lane.b32.xlu1 %v1138_v45, %s2395_s27 }
 0x581   : > { %v1139_v48 = vmul.f32 %v1130_v29, %v1123_v33 }
 0x583   : > { %1162 = vrot.lane.b32.xlu0 %v1139_v48, %s2395_s27 }
 0x5e3   : > { %v1149_v21 = vpop.permute.xlu1 %1148 }
 0x5e4   : > { %v1172_v53 = vsel %vm539_vm1, %v1149_v21, 0.0 }
 0x5e5   : > { %v1151_v49 = vpop.permute.xlu0 %1150  ;;  %1173 = vadd.xlane.f32.xlu1 %v1172_v53 }
 0x5e6   : > { %v1175_v17 = vsel %vm539_vm1, %v1151_v49, 0.0 }
 0x5e7   : > { %1176 = vadd.xlane.f32.xlu0 %v1175_v17 }
 0x5e9   : > { %v1153_v30 = vpop.permute.xlu1 %1152 }
 0x5ea   : > { %v1178_v5 = vsel %vm539_vm1, %v1153_v30, 0.0 }
 0x5eb   : > { %1179 = vadd.xlane.f32.xlu0 %v1178_v5 }
 0x5ed   : > { %v1155_v58 = vpop.permute.xlu0 %1154  ;;  %v1157_v52 = vpop.permute.xlu1 %1156 }
 0x5ee   : > { %v1181_v16 = vsel %vm539_vm1, %v1155_v58, 0.0  ;;  %v1184_v42 = vsel %vm539_vm1, %v1157_v52, 0.0 }
 0x5ef   : > { %1182 = vadd.xlane.f32.xlu1 %v1181_v16  ;;  %1185 = vadd.xlane.f32.xlu0 %v1184_v42 }
 0x5f1   : > { %v1159_v59 = vpop.permute.xlu0 %1158  ;;  %v1161_v60 = vpop.permute.xlu1 %1160 }
 0x5f2   : > { %v1187_v61 = vsel %vm539_vm1, %v1159_v59, 0.0  ;;  %v1190_v63 = vsel %vm539_vm1, %v1161_v60, 0.0 }
 0x5f3   : > { %1188 = vadd.xlane.f32.xlu1 %v1187_v61  ;;  %1191 = vadd.xlane.f32.xlu0 %v1190_v63 }
 0x5f5   : > { %v1163_v1 = vpop.permute.xlu0 %1162 }
 0x5f6   : > { %v1193_v11 = vsel %vm539_vm1, %v1163_v1, 0.0 }
 0x5f7   : > { %1194 = vadd.xlane.f32.xlu1 %v1193_v11 }
 0x672   : > { %v1174_v3 = vpop.xlane.xlu1 %1173 }
 0x673   : > { %v1207_v4 = vrot.slane %v1174_v3, %v2531_v57 }
 0x674   : > { %v1177_v54 = vpop.xlane.xlu0 %1176 }
 0x675   : > { %v1211_v2 = vrot.slane %v1177_v54, %v2531_v57 }
 0x677   : > { %v1236_v26 = vsel %vm606_vm2, %v1211_v2, %v1207_v4 }
 0x678   : > { %v1180_v13 = vpop.xlane.xlu0 %1179 }
 0x679   : > { %v1215_v6 = vrot.slane %v1180_v13, %v2531_v57 }
 0x67b   : > { %v1237_v7 = vsel %vm608_vm3, %v1215_v6, %v1236_v26 }
 0x67c   : > { %v1186_v15 = vpop.xlane.xlu0 %1185  ;;  %v1183_v0 = vpop.xlane.xlu1 %1182 }
 0x67d   : > { %v1219_v27 = vrot.slane %v1183_v0, %v2531_v57  ;;  %v1223_v28 = vrot.slane %v1186_v15, %v2531_v57 }
 0x67f   : > { %v1238_v29 = vsel %vm610_vm4, %v1219_v27, %v1237_v7 }
 0x680   : > { %v1192_v18 = vpop.xlane.xlu0 %1191  ;;  %v1189_v36 = vpop.xlane.xlu1 %1188  ;;  %v1239_v38 = vsel %vm612_vm5, %v1223_v28, %v1238_v29 }
 0x681   : > { %v1227_v37 = vrot.slane %v1189_v36, %v2531_v57  ;;  %v1231_v56 = vrot.slane %v1192_v18, %v2531_v57 }
 0x683   : > { %v1240_v62 = vsel %vm614_vm6, %v1227_v37, %v1239_v38 }
 0x684   : > { %v1195_v8 = vpop.xlane.xlu1 %1194  ;;  %v1241_v10 = vsel %vm616_vm7, %v1231_v56, %v1240_v62 }
 0x685   : > { %v1235_v39 = vrot.slane %v1195_v8, %v2531_v57 }
 0x687   : > { %v1242_v19 = vsel %vm618_vm8, %v1235_v39, %v1241_v10 }
 0x688   : > { %v1244_v22 = vsel %vm621_vm9, %v1242_v19, -inf }
 0x689   : > { %1245 = vmax.xlane.f32.xlu0 %v1244_v22 }
 0x716   : > { %v1246_v24 = vpop.xlane.xlu0 %1245 }
 0x717   : > { %v1251_v25 = vrot.slane %v1246_v24, %v2550_v31  ;;  %v1255_v20 = vrot.slane %v1246_v24, %v2553_v32  ;;  %v1259_v14 = vrot.slane %v1246_v24, %v2556_v34  ;;  %v1267_v12 = vrot.slane %v1246_v24, %v2565_v40 }
 0x718   : > { %v1263_v9 = vrot.slane %v1246_v24, %v2559_v35  ;;  %v1275_v23 = vrot.slane %v1246_v24, %v2573_v51  ;;  %v1271_v21 = vrot.slane %v1246_v24, %v2569_v47  ;;  %v1279_v5 = vrot.slane %v1246_v24, %v2577_v55 }
 0x719   : > { %v1288_v43 = vsub.f32 %v1174_v3, %v1251_v25  ;;  %v1289_v44 = vsub.f32 %v1177_v54, %v1255_v20  ;;  %v1290_v45 = vsub.f32 %v1180_v13, %v1259_v14  ;;  %v1292_v46 = vsub.f32 %v1186_v15, %v1267_v12 }
 0x71a   : > { %v1291_v49 = vsub.f32 %v1183_v0, %v1263_v9  ;;  %v1294_v17 = vsub.f32 %v1192_v18, %v1275_v23  ;;  %v1293_v58 = vsub.f32 %v1189_v36, %v1271_v21  ;;  %v1295_v42 = vsub.f32 %v1195_v8, %v1279_v5 }
 0x71b   : > { %v1296_v33 = vmul.f32 1.442695, %v1288_v43  ;;  %v1298_v48 = vmul.f32 1.442695, %v1289_v44  ;;  %v1300_v53 = vmul.f32 1.442695, %v1290_v45 }
 0x71c   : > { %v1304_v30 = vmul.f32 1.442695, %v1292_v46  ;;  %v1302_v52 = vmul.f32 1.442695, %v1291_v49  ;;  %v1308_v16 = vmul.f32 1.442695, %v1294_v17 }
 0x71d   : > { %2337 = vpow2.f32 %v1296_v33  ;;  %v1306_v59 = vmul.f32 1.442695, %v1293_v58  ;;  %v1310_v63 = vmul.f32 1.442695, %v1295_v42  ;;  %v1541_v42 = vld [vmem:[%s2892_s6] sm:$0xff] }
 0x71e   : > { %2339 = vpow2.f32 %v1298_v48 }
 0x71f   : > { %2341 = vpow2.f32 %v1300_v53 }
 0x720   : > { %2343 = vpow2.f32 %v1304_v30 }
 0x721   : > { %2345 = vpow2.f32 %v1302_v52 }
 0x722   : > { %2347 = vpow2.f32 %v1308_v16 }
 0x723   : > { %2349 = vpow2.f32 %v1306_v59  ;;  %v1542_v59 = vld [vmem:[%s2892_s6 + $0x8] sm:$0xff] }
 0x724   : > { %2351 = vpow2.f32 %v1310_v63  ;;  %v1544_v63 = vld [vmem:[%s2892_s6 + $0x18] sm:$0xff] }
 0x727   : > { %v2338_v60 = vpop.eup %2337 }
 0x728   : > { %v2340_v61 = vpop.eup %2339  ;;  %1321 = vperm.xlu1 %2283, %v2338_v60  }
 0x729   : > { %1324 = vperm.xlu0 %2284, %v2340_v61   ;;  %v2342_v1 = vpop.eup %2341 }
 0x72a   : > { %v2344_v11 = vpop.eup %2343 }
 0x72b   : > { %v2346_v54 = vpop.eup %2345 }
 0x72c   : > { %1327 = vperm.xlu1 %2283, %v2342_v1   ;;  %v2348_v3 = vpop.eup %2347 }
 0x72d   : > { %1333 = vperm.xlu0 %2284, %v2344_v11   ;;  %v2350_v13 = vpop.eup %2349 }
 0x72e   : > { %v2352_v2 = vpop.eup %2351 }
 0x730   : > { %1330 = vperm.xlu1 %2283, %v2346_v54  }
 0x731   : > { %1339 = vperm.xlu0 %2284, %v2348_v3  }
 0x734   : > { %1336 = vperm.xlu1 %2283, %v2350_v13  }
 0x738   : > { %1342 = vperm.xlu1 %2283, %v2352_v2  }
 0x7a7   : > { %v1322_v6 = vpop.permute.xlu1 %1321 }
 0x7a8   : > { %v1325_v4 = vpop.permute.xlu0 %1324  ;;  %v1347_v26 = vrot.slane %v1322_v6, %v2531_v57 }
 0x7a9   : > { %v1351_v0 = vrot.slane %v1325_v4, %v2531_v57  ;;  %v2375_v4 = vld [vmem:[%s2459_s11 + $0x10] sm:$0xff]  }
 0x7ab   : > { %v1328_v15 = vpop.permute.xlu1 %1327  ;;  %v1376_v29 = vsel %vm606_vm2, %v1351_v0, %v1347_v26 }
 0x7ac   : > { %v1355_v27 = vrot.slane %v1328_v15, %v2531_v57  ;;  %v1334_v7 = vpop.permute.xlu0 %1333  ;;  %v519_v15 = vunpack.c.h.bf16 %v2375_v4 }
 0x7ad   : > { %v1363_v56 = vrot.slane %v1334_v7, %v2531_v57 }
 0x7ae   : > { %v1377_v36 = vsel %vm608_vm3, %v1355_v27, %v1376_v29 }
 0x7af   : > { %v1331_v28 = vpop.permute.xlu1 %1330 }
 0x7b0   : > { %v1359_v18 = vrot.slane %v1331_v28, %v2531_v57  ;;  %v1340_v62 = vpop.permute.xlu0 %1339  ;;  %v2376_v28 = vld [vmem:[%s2459_s11 + $0x18] sm:$0xff]  }
 0x7b1   : > { %v1371_v19 = vrot.slane %v1340_v62, %v2531_v57  ;;  %v520_v29 = vunpack.c.h.bf16 %v2376_v28 }
 0x7b2   : > { %v1378_v37 = vsel %vm610_vm4, %v1359_v18, %v1377_v36 }
 0x7b3   : > { %v1337_v38 = vpop.permute.xlu1 %1336  ;;  %v1379_v39 = vsel %vm612_vm5, %v1363_v56, %v1378_v37 }
 0x7b4   : > { %v1367_v8 = vrot.slane %v1337_v38, %v2531_v57  ;;  %v2377_v38 = vld [vmem:[%s2459_s11 + $0x20] sm:$0xff]  }
 0x7b5   : > { %v521_v62 = vunpack.c.h.bf16 %v2377_v38 }
 0x7b6   : > { %v1380_v10 = vsel %vm614_vm6, %v1367_v8, %v1379_v39 }
 0x7b7   : > { %v1343_v22 = vpop.permute.xlu1 %1342  ;;  %v1381_v25 = vsel %vm616_vm7, %v1371_v19, %v1380_v10 }
 0x7b8   : > { %v1375_v24 = vrot.slane %v1343_v22, %v2531_v57 }
 0x7ba   : > { %v1382_v20 = vsel %vm618_vm8, %v1375_v24, %v1381_v25 }
 0x7bb   : > { %v1384_v14 = vsel %vm621_vm9, %v1382_v20, 0.0  ;;  %v2378_v20 = vld [vmem:[%s2459_s11 + $0x28] sm:$0xff]  }
 0x7bc   : > { %1385 = vadd.xlane.f32.xlu0 %v1384_v14  ;;  %v522_v14 = vunpack.c.h.bf16 %v2378_v20 }
 0x849   : > { %v1386_v12 = vpop.xlane.xlu0 %1385 }
 0x84a   : > { %2353 = vrcp.f32 %v1386_v12 }
 0x854   : > { %v2354_v9 = vpop.eup %2353 }
 0x855   : > { %v1392_v43 = vrot.slane %v2354_v9, %v2550_v31  ;;  %v1396_v45 = vrot.slane %v2354_v9, %v2553_v32  ;;  %v1400_v46 = vrot.slane %v2354_v9, %v2556_v34  ;;  %v1404_v48 = vrot.slane %v2354_v9, %v2559_v35 }
 0x856   : > { %v1408_v49 = vrot.slane %v2354_v9, %v2565_v40  ;;  %v1412_v17 = vrot.slane %v2354_v9, %v2569_v47  ;;  %v1416_v5 = vrot.slane %v2354_v9, %v2573_v51  ;;  %v1420_v52 = vrot.slane %v2354_v9, %v2577_v55 }
 0x857   : > { %v1429_v44 = vmul.f32 %v2338_v60, %v1392_v43  ;;  %v1430_v23 = vmul.f32 %v2340_v61, %v1396_v45  ;;  %v1431_v33 = vmul.f32 %v2342_v1, %v1400_v46  ;;  %v1432_v21 = vmul.f32 %v2346_v54, %v1404_v48  ;;  %v1543_v60 = vld [vmem:[%s2892_s6 + $0x10] sm:$0xff]  ;;  %v2373_v54 = vld [vmem:[%s2459_s11 + $0x8] sm:$0xff]  }
 0x858   : > { %v1433_v53 = vmul.f32 %v2344_v11, %v1408_v49  ;;  %v1434_v30 = vmul.f32 %v2350_v13, %v1412_v17  ;;  %v1435_v58 = vmul.f32 %v2348_v3, %v1416_v5  ;;  %v1436_v16 = vmul.f32 %v2352_v2, %v1420_v52  ;;  %v2374_v2 = vld [vmem:[%s2459_s11] sm:$0xff]   ;;  %v2379_v48 = vld [vmem:[%s2459_s11 + $0x30] sm:$0xff]  }
 0x859   : > { %1439 = vperm.xlu1 %2283, %v1429_v44   ;;  %v2259_v61 = vpack.c.bf16 %v1542_v59, %v1541_v42  ;;  %v2262_v1 = vpack.c.bf16 %v1544_v63, %v1543_v60  ;;  %v518_v3 = vunpack.c.h.bf16 %v2373_v54  ;;  %v517_v6 = vunpack.c.h.bf16 %v2374_v2  ;;  %v2380_v60 = vld [vmem:[%s2459_s11 + $0x38] sm:$0xff]   ;;  %s2163_s11 = sshll.u32 %s2895_s28, 1  ;;  %s2164_s28 = sshll.u32 %s2897_s25, 3 }
 0x85a   : > { %s2782_s17 = scalar_lea.vmem %s2887_s1, %s2163_s11  ;;  %s303_s20 = scalar_lea.vmem %s2893_s7, %s2164_s28 }
 0x85b   : > { %2260 = vmatpush3.bf16.msra.mxu1 %v2259_v61  ;;  %v524_v61 = vunpack.c.h.bf16 %v2380_v60 }
 0x85c   : > { %2261 = vmatprep.subr.bf16.mxu1 %v2390_v41 }
 0x85d   : > { %1444 = vperm.xlu1 %2283, %v1430_v23  }
 0x85f   : > { %2263 = vmatpush3.bf16.msra.mxu1 %v2262_v1 }
 0x861   : > { %1449 = vperm.xlu1 %2283, %v1431_v33  }
 0x865   : > { %1454 = vperm.xlu1 %2283, %v1432_v21   ;;  %v523_v21 = vunpack.c.h.bf16 %v2379_v48 }
 0x869   : > { %1459 = vperm.xlu1 %2283, %v1433_v53  }
 0x86d   : > { %1464 = vperm.xlu1 %2283, %v1434_v30  }
 0x871   : > { %1469 = vperm.xlu1 %2283, %v1435_v58  }
 0x875   : > { %1474 = vperm.xlu1 %2283, %v1436_v16  }
 0x8d8   : > { %v1440_v11 = vpop.permute.xlu1 %1439 }
 0x8d9   : > { %v1477_v27 = vmul.f32 %v1440_v11, %v517_v6 }
 0x8db   : > { %v1485_v37 = vsel %vm379_vm0, %v1477_v27, 0.0 }
 0x8dc   : > { %v1445_v13 = vpop.permute.xlu1 %1444  ;;  %v1486_v19 = vrot.slane %v1485_v37, 4 }
 0x8dd   : > { %v1478_v0 = vmul.f32 %v1445_v13, %v518_v3 }
 0x8de   : > { %v1487_v44 = vadd.f32 %v1486_v19, %v1485_v37 }
 0x8df   : > { %v1492_v18 = vsel %vm379_vm0, %v1478_v0, 0.0 }
 0x8e0   : > { %v1450_v26 = vpop.permute.xlu1 %1449  ;;  %v1493_v8 = vrot.slane %v1492_v18, 4  ;;  %v1488_v5 = vrot.slane %v1487_v44, 2 }
 0x8e1   : > { %v1479_v7 = vmul.f32 %v1450_v26, %v519_v15 }
 0x8e2   : > { %v1494_v12 = vadd.f32 %v1493_v8, %v1492_v18  ;;  %v1489_v3 = vadd.f32 %v1488_v5, %v1487_v44 }
 0x8e3   : > { %v1499_v41 = vsel %vm379_vm0, %v1479_v7, 0.0 }
 0x8e4   : > { %v1455_v36 = vpop.permute.xlu1 %1454  ;;  %v1500_v39 = vrot.slane %v1499_v41, 4  ;;  %v1495_v49 = vrot.slane %v1494_v12, 2  ;;  %v1490_v18 = vrot.slane %v1489_v3, 1 }
 0x8e5   : > { %v1480_v56 = vmul.f32 %v1455_v36, %v520_v29 }
 0x8e6   : > { %v1501_v9 = vadd.f32 %v1500_v39, %v1499_v41  ;;  %v1496_v63 = vadd.f32 %v1495_v49, %v1494_v12  ;;  %v1491_v19 = vadd.f32 %v1490_v18, %v1489_v3 }
 0x8e7   : > { %v1506_v10 = vsel %vm379_vm0, %v1480_v56, 0.0 }
 0x8e8   : > { %v1507_v22 = vrot.slane %v1506_v10, 4  ;;  %v1460_v24 = vpop.permute.xlu1 %1459  ;;  %v1502_v17 = vrot.slane %v1501_v9, 2  ;;  %v1497_v26 = vrot.slane %v1496_v63, 1 }
 0x8e9   : > { %v1481_v25 = vmul.f32 %v1460_v24, %v521_v62 }
 0x8ea   : > { %v1508_v45 = vadd.f32 %v1507_v22, %v1506_v10  ;;  %v1503_v11 = vadd.f32 %v1502_v17, %v1501_v9  ;;  %v1498_v38 = vadd.f32 %v1497_v26, %v1496_v63 }
 0x8eb   : > { %v1513_v43 = vsel %vm379_vm0, %v1481_v25, 0.0 }
 0x8ec   : > { %v1514_v23 = vrot.slane %v1513_v43, 4  ;;  %v1465_v46 = vpop.permute.xlu1 %1464  ;;  %v1509_v58 = vrot.slane %v1508_v45, 2  ;;  %v1504_v28 = vrot.slane %v1503_v11, 1 }
 0x8ed   : > { %v1482_v33 = vmul.f32 %v1465_v46, %v522_v14  ;;  %v1553_v14 = vsel %vm606_vm2, %v1498_v38, %v1491_v19 }
 0x8ee   : > { %v1515_v53 = vadd.f32 %v1514_v23, %v1513_v43  ;;  %v1510_v13 = vadd.f32 %v1509_v58, %v1508_v45  ;;  %v1505_v10 = vadd.f32 %v1504_v28, %v1503_v11  ;;  %v1635_v58 = vld [vmem:[%s2782_s17] sm:$0x3] }
 0x8ef   : > { %v1520_v30 = vsel %vm379_vm0, %v1482_v33, 0.0  ;;  %v1643_v63 = vunpack.c.l.bf16 %v1635_v58 }
 0x8f0   : > { %v1521_v52 = vrot.slane %v1520_v30, 4  ;;  %v1470_v16 = vpop.permute.xlu1 %1469  ;;  %v1516_v42 = vrot.slane %v1515_v53, 2  ;;  %v1511_v41 = vrot.slane %v1510_v13, 1  ;;  %v1554_v43 = vsel %vm608_vm3, %v1505_v10, %v1553_v14  ;;  %v1640_v10 = vld [vmem:[%s2782_s17 + $0xa] sm:$0x3] }
 0x8f1   : > { %v1483_v59 = vmul.f32 %v1470_v16, %v523_v21  ;;  %v1641_v14 = vld [vmem:[%s2782_s17 + $0xc] sm:$0x3] }
 0x8f2   : > { %v1522_v1 = vadd.f32 %v1521_v52, %v1520_v30  ;;  %v1517_v15 = vadd.f32 %v1516_v42, %v1515_v53  ;;  %v1512_v22 = vadd.f32 %v1511_v41, %v1510_v13  ;;  %v1636_v42 = vld [vmem:[%s2782_s17 + $0x2] sm:$0x3] }
 0x8f3   : > { %v1527_v54 = vsel %vm379_vm0, %v1483_v59, 0.0  ;;  %v1637_v59 = vld [vmem:[%s2782_s17 + $0x4] sm:$0x3]  ;;  %v1644_v11 = vunpack.c.l.bf16 %v1636_v42 }
 0x8f4   : > { %v1523_v2 = vrot.slane %v1522_v1, 2  ;;  %v1528_v6 = vrot.slane %v1527_v54, 4  ;;  %v1475_v4 = vpop.permute.xlu1 %1474  ;;  %v1518_v56 = vrot.slane %v1517_v15, 1  ;;  %v1555_v45 = vsel %vm610_vm4, %v1512_v22, %v1554_v43 }
 0x8f5   : > { %v1484_v0 = vmul.f32 %v1475_v4, %v524_v61  ;;  %v1648_v22 = vunpack.c.l.bf16 %v1640_v10 }
 0x8f6   : > { %v1524_v27 = vadd.f32 %v1523_v2, %v1522_v1  ;;  %v1529_v7 = vadd.f32 %v1528_v6, %v1527_v54  ;;  %v1519_v20 = vadd.f32 %v1518_v56, %v1517_v15  ;;  %v1645_v54 = vunpack.c.l.bf16 %v1637_v59  ;;  %v1639_v6 = vld [vmem:[%s2782_s17 + $0x8] sm:$0x3] }
 0x8f7   : > { %v1534_v29 = vsel %vm379_vm0, %v1484_v0, 0.0 }
 0x8f8   : > { %v1530_v36 = vrot.slane %v1529_v7, 2  ;;  %v1535_v37 = vrot.slane %v1534_v29, 4  ;;  %v1525_v62 = vrot.slane %v1524_v27, 1  ;;  %v1556_v46 = vsel %vm612_vm5, %v1519_v20, %v1555_v45 }
 0x8fa   : > { %v1531_v8 = vadd.f32 %v1530_v36, %v1529_v7  ;;  %v1536_v39 = vadd.f32 %v1535_v37, %v1534_v29  ;;  %v1526_v12 = vadd.f32 %v1525_v62, %v1524_v27  ;;  %v1647_v27 = vunpack.c.l.bf16 %v1639_v6  ;;  %v1638_v36 = vld [vmem:[%s2782_s17 + $0x6] sm:$0x3] }
 0x8fb   : > { %v1646_v38 = vunpack.c.l.bf16 %v1638_v36 }
 0x8fc   : > { %v1532_v24 = vrot.slane %v1531_v8, 1  ;;  %v1537_v25 = vrot.slane %v1536_v39, 2  ;;  %v1557_v48 = vsel %vm614_vm6, %v1526_v12, %v1556_v46  ;;  %v1642_v46 = vld [vmem:[%s2782_s17 + $0xe] sm:$0x3] }
 0x8fe   : > { %v1538_v9 = vadd.f32 %v1537_v25, %v1536_v39  ;;  %v1533_v44 = vadd.f32 %v1532_v24, %v1531_v8 }
 0x900   : > { %v1539_v23 = vrot.slane %v1538_v9, 1  ;;  %v1558_v21 = vsel %vm616_vm7, %v1533_v44, %v1557_v48  ;;  %v1650_v48 = vunpack.c.l.bf16 %v1642_v46 }
 0x902   : > { %v1540_v33 = vadd.f32 %v1539_v23, %v1538_v9  ;;  %v1649_v9 = vunpack.c.l.bf16 %v1641_v14 }
 0x904   : > { %v1559_v49 = vsel %vm618_vm8, %v1540_v33, %v1558_v21 }
 0x905   : > { %2250 = vmatmul.mubr.msk.f32.vlgmr.msra.gmra.mrb[6].mxu1 %vm379_vm0, %v1559_v49 }
 0x9d8   : > { %v1628_v53 = vpop.f32.mrb[6].mxu1 }
 0x9d9   : > { %vm1632_vm11 = vcmp.ge.f32.partialorder %v1628_v53, 0.0  ;;  %v1633_v17 = vmul.f32 0.01, %v1628_v53  ;;  %v2251_v30 = vpop.f32.mrb[7].mxu1 }
 0x9db   : > { %v1634_v5 = vsel %vm1632_vm11, %v1628_v53, %v1633_v17 }
 0x9dc   : > { %v1652_v52 = vcombine.high %v1634_v5, %v1634_v5  ;;  %v1659_v16 = vrot.slane %v1634_v5, %v2653_v50 }
 0x9de   : > { %v1666_v60 = vrot.slane %v1652_v52, %v2653_v50  ;;  %v1667_v61 = vcombine.high %v1659_v16, %v1659_v16  ;;  %v1675_v1 = vrot.slane %v1659_v16, %v2653_v50 }
 0x9e0   : > { %v1704_v3 = vrot.slane %v1675_v1, %v2550_v31  ;;  %v1689_v13 = vrot.slane %v1667_v61, %v2653_v50  ;;  %v1697_v2 = vcombine.high %v1675_v1, %v1675_v1  ;;  %v1682_v4 = vrot.slane %v1666_v60, %v2653_v50 }
 0x9e1   : > { %v1668_v28 = vcombine.high %v1666_v60, %v1666_v60 }
 0x9e2   : > { %v1741_v15 = vmul.f32 %v1704_v3, %v1643_v63  ;;  %v1708_v0 = vrot.slane %v1689_v13, %v2550_v31  ;;  %v1712_v26 = vrot.slane %v1697_v2, %v2550_v31  ;;  %v1720_v7 = vrot.slane %v1682_v4, %v2550_v31 }
 0x9e3   : > { %v1699_v37 = vcombine.high %v1689_v13, %v1689_v13  ;;  %v1696_v19 = vrot.slane %v1668_v28, %v2653_v50  ;;  %v1698_v12 = vcombine.high %v1682_v4, %v1682_v4 }
 0x9e4   : > { %v1750_v29 = vsel %vm1749_vm12, %v1741_v15, 0.0  ;;  %v1742_v18 = vmul.f32 %v1708_v0, %v1644_v11  ;;  %v1743_v41 = vmul.f32 %v1712_v26, %v1645_v54  ;;  %v1745_v8 = vmul.f32 %v1720_v7, %v1647_v27 }
 0x9e5   : > { %1751 = vadd.xlane.f32.xlu0 %v1750_v29  ;;  %v1716_v39 = vrot.slane %v1699_v37, %v2550_v31  ;;  %v1724_v20 = vrot.slane %v1696_v19, %v2550_v31  ;;  %v1728_v45 = vrot.slane %v1698_v12, %v2550_v31  ;;  %v1700_v23 = vcombine.high %v1696_v19, %v1696_v19 }
 0x9e6   : > { %v1753_v56 = vsel %vm1749_vm12, %v1742_v18, 0.0  ;;  %v1756_v62 = vsel %vm1749_vm12, %v1743_v41, 0.0  ;;  %v1762_v24 = vsel %vm1749_vm12, %v1745_v8, 0.0 }
 0x9e7   : > { %1754 = vadd.xlane.f32.xlu1 %v1753_v56  ;;  %v1744_v25 = vmul.f32 %v1716_v39, %v1646_v38  ;;  %v1746_v44 = vmul.f32 %v1724_v20, %v1648_v22  ;;  %v1747_v33 = vmul.f32 %v1728_v45, %v1649_v9  ;;  %v1732_v21 = vrot.slane %v1700_v23, %v2550_v31 }
 0x9e9   : > { %1757 = vadd.xlane.f32.xlu0 %v1756_v62  ;;  %v1759_v43 = vsel %vm1749_vm12, %v1744_v25, 0.0  ;;  %v1765_v50 = vsel %vm1749_vm12, %v1746_v44, 0.0  ;;  %v1768_v49 = vsel %vm1749_vm12, %v1747_v33, 0.0  ;;  %v1748_v53 = vmul.f32 %v1732_v21, %v1650_v48 }
 0x9eb   : > { %v1771_v17 = vsel %vm1749_vm12, %v1748_v53, 0.0 }
 0x9ed   : > { %1763 = vadd.xlane.f32.xlu0 %v1762_v24 }
 0x9f1   : > { %1760 = vadd.xlane.f32.xlu0 %v1759_v43 }
 0x9f5   : > { %1766 = vadd.xlane.f32.xlu0 %v1765_v50 }
 0x9f9   : > { %1769 = vadd.xlane.f32.xlu0 %v1768_v49 }
 0x9fd   : > { %1772 = vadd.xlane.f32.xlu0 %v1771_v17 }
 0xa72   : > { %v1752_v30 = vpop.xlane.xlu0 %1751 }
 0xa73   : > { %v1785_v59 = vrot.slane %v1752_v30, %v2531_v57 }
 0xa74   : > { %v1755_v52 = vpop.xlane.xlu1 %1754 }
 0xa75   : > { %v1789_v42 = vrot.slane %v1755_v52, %v2531_v57 }
 0xa76   : > { %v1758_v5 = vpop.xlane.xlu0 %1757 }
 0xa77   : > { %v1793_v60 = vrot.slane %v1758_v5, %v2531_v57  ;;  %v1814_v63 = vsel %vm606_vm2, %v1789_v42, %v1785_v59 }
 0xa79   : > { %v1815_v11 = vsel %vm608_vm3, %v1793_v60, %v1814_v63 }
 0xa7a   : > { %v1764_v58 = vpop.xlane.xlu0 %1763 }
 0xa7b   : > { %v1801_v2 = vrot.slane %v1764_v58, %v2531_v57 }
 0xa7e   : > { %v1761_v16 = vpop.xlane.xlu0 %1760 }
 0xa7f   : > { %v1797_v1 = vrot.slane %v1761_v16, %v2531_v57 }
 0xa81   : > { %v1816_v3 = vsel %vm610_vm4, %v1797_v1, %v1815_v11 }
 0xa82   : > { %v1767_v61 = vpop.xlane.xlu0 %1766  ;;  %v1817_v15 = vsel %vm612_vm5, %v1801_v2, %v1816_v3 }
 0xa83   : > { %v1805_v13 = vrot.slane %v1767_v61, %v2531_v57 }
 0xa85   : > { %v1818_v26 = vsel %vm614_vm6, %v1805_v13, %v1817_v15 }
 0xa86   : > { %v1770_v54 = vpop.xlane.xlu0 %1769 }
 0xa87   : > { %v1809_v6 = vrot.slane %v1770_v54, %v2531_v57 }
 0xa89   : > { %v1819_v27 = vsel %vm616_vm7, %v1809_v6, %v1818_v26 }
 0xa8a   : > { %v1773_v4 = vpop.xlane.xlu0 %1772 }
 0xa8b   : > { %v1813_v0 = vrot.slane %v1773_v4, %v2531_v57 }
 0xa8d   : > { %v1820_v7 = vsel %vm618_vm8, %v1813_v0, %v1819_v27 }
 0xa8e   : > { %v1823_v28 = vsel %vm1822_vm13, %v1820_v7, -inf }
 0xa8f   : > { %1824 = vmax.xlane.f32.xlu0 %v1823_v28 }
 0xb1c   : > { %v1825_v29 = vpop.xlane.xlu0 %1824 }
 0xb1d   : > { %v1830_v18 = vrot.slane %v1825_v29, %v2550_v31  ;;  %v1834_v41 = vrot.slane %v1825_v29, %v2553_v32  ;;  %v1838_v36 = vrot.slane %v1825_v29, %v2556_v34  ;;  %v1842_v37 = vrot.slane %v1825_v29, %v2559_v35 }
 0xb1e   : > { %v1846_v56 = vrot.slane %v1825_v29, %v2565_v40  ;;  %v1850_v39 = vrot.slane %v1825_v29, %v2569_v47  ;;  %v1854_v24 = vrot.slane %v1825_v29, %v2573_v51  ;;  %v1858_v14 = vrot.slane %v1825_v29, %v2577_v55 }
 0xb1f   : > { %v1867_v38 = vsub.f32 %v1752_v30, %v1830_v18  ;;  %v1868_v62 = vsub.f32 %v1755_v52, %v1834_v41  ;;  %v1869_v8 = vsub.f32 %v1758_v5, %v1838_v36  ;;  %v1870_v10 = vsub.f32 %v1761_v16, %v1842_v37 }
 0xb20   : > { %v1871_v25 = vsub.f32 %v1764_v58, %v1846_v56  ;;  %v1872_v12 = vsub.f32 %v1767_v61, %v1850_v39  ;;  %v1873_v43 = vsub.f32 %v1770_v54, %v1854_v24  ;;  %v1874_v45 = vsub.f32 %v1773_v4, %v1858_v14 }
 0xb21   : > { %v1875_v19 = vmul.f32 1.442695, %v1867_v38  ;;  %v1877_v22 = vmul.f32 1.442695, %v1868_v62  ;;  %v1879_v20 = vmul.f32 1.442695, %v1869_v8 }
 0xb22   : > { %v1881_v9 = vmul.f32 1.442695, %v1870_v10  ;;  %v1883_v44 = vmul.f32 1.442695, %v1871_v25  ;;  %v1885_v23 = vmul.f32 1.442695, %v1872_v12 }
 0xb23   : > { %2355 = vpow2.f32 %v1875_v19  ;;  %v1887_v46 = vmul.f32 1.442695, %v1873_v43  ;;  %v1889_v50 = vmul.f32 1.442695, %v1874_v45 }
 0xb24   : > { %2357 = vpow2.f32 %v1877_v22 }
 0xb25   : > { %2359 = vpow2.f32 %v1879_v20 }
 0xb26   : > { %2361 = vpow2.f32 %v1881_v9 }
 0xb27   : > { %2363 = vpow2.f32 %v1883_v44 }
 0xb28   : > { %2365 = vpow2.f32 %v1885_v23 }
 0xb29   : > { %2367 = vpow2.f32 %v1887_v46 }
 0xb2a   : > { %2369 = vpow2.f32 %v1889_v50 }
 0xb2d   : > { %v2356_v33 = vpop.eup %2355 }
 0xb2e   : > { %v2358_v48 = vpop.eup %2357  ;;  %1900 = vperm.xlu0 %2284, %v2356_v33  }
 0xb2f   : > { %1903 = vperm.xlu1 %2283, %v2358_v48   ;;  %v2360_v21 = vpop.eup %2359 }
 0xb30   : > { %v2362_v49 = vpop.eup %2361 }
 0xb31   : > { %v2364_v53 = vpop.eup %2363 }
 0xb32   : > { %1906 = vperm.xlu0 %2284, %v2360_v21   ;;  %v2366_v17 = vpop.eup %2365 }
 0xb33   : > { %1909 = vperm.xlu1 %2283, %v2362_v49   ;;  %v2368_v30 = vpop.eup %2367 }
 0xb34   : > { %v2370_v5 = vpop.eup %2369 }
 0xb36   : > { %1912 = vperm.xlu0 %2284, %v2364_v53  }
 0xb37   : > { %1915 = vperm.xlu1 %2283, %v2366_v17  }
 0xb3a   : > { %1918 = vperm.xlu0 %2284, %v2368_v30  }
 0xb3b   : > { %1921 = vperm.xlu1 %2283, %v2370_v5  }
 0xbad   : > { %v1901_v58 = vpop.permute.xlu0 %1900 }
 0xbae   : > { %v1904_v52 = vpop.permute.xlu1 %1903  ;;  %v1926_v42 = vrot.slane %v1901_v58, %v2531_v57 }
 0xbaf   : > { %v1930_v16 = vrot.slane %v1904_v52, %v2531_v57 }
 0xbb1   : > { %v1907_v59 = vpop.permute.xlu0 %1906  ;;  %v1955_v63 = vsel %vm606_vm2, %v1930_v16, %v1926_v42 }
 0xbb2   : > { %v1910_v60 = vpop.permute.xlu1 %1909  ;;  %v1934_v61 = vrot.slane %v1907_v59, %v2531_v57 }
 0xbb3   : > { %v1938_v1 = vrot.slane %v1910_v60, %v2531_v57 }
 0xbb4   : > { %v1956_v11 = vsel %vm608_vm3, %v1934_v61, %v1955_v63 }
 0xbb5   : > { %v1913_v54 = vpop.permute.xlu0 %1912  ;;  %v1957_v6 = vsel %vm610_vm4, %v1938_v1, %v1956_v11 }
 0xbb6   : > { %v1916_v3 = vpop.permute.xlu1 %1915  ;;  %v1942_v13 = vrot.slane %v1913_v54, %v2531_v57 }
 0xbb7   : > { %v1946_v2 = vrot.slane %v1916_v3, %v2531_v57 }
 0xbb8   : > { %v1958_v4 = vsel %vm612_vm5, %v1942_v13, %v1957_v6 }
 0xbb9   : > { %v1919_v15 = vpop.permute.xlu0 %1918  ;;  %v1959_v7 = vsel %vm614_vm6, %v1946_v2, %v1958_v4 }
 0xbba   : > { %v1922_v0 = vpop.permute.xlu1 %1921  ;;  %v1950_v26 = vrot.slane %v1919_v15, %v2531_v57 }
 0xbbb   : > { %v1954_v27 = vrot.slane %v1922_v0, %v2531_v57 }
 0xbbc   : > { %v1960_v28 = vsel %vm616_vm7, %v1950_v26, %v1959_v7 }
 0xbbd   : > { %v1961_v29 = vsel %vm618_vm8, %v1954_v27, %v1960_v28 }
 0xbbe   : > { %v1963_v18 = vsel %vm1822_vm13, %v1961_v29, 0.0 }
 0xbbf   : > { %1964 = vadd.xlane.f32.xlu0 %v1963_v18 }
 0xc4c   : > { %v1965_v41 = vpop.xlane.xlu0 %1964 }
 0xc4d   : > { %2371 = vrcp.f32 %v1965_v41 }
 0xc57   : > { %v2372_v36 = vpop.eup %2371 }
 0xc58   : > { %v1971_v37 = vrot.slane %v2372_v36, %v2550_v31  ;;  %v1975_v38 = vrot.slane %v2372_v36, %v2553_v32  ;;  %v1979_v8 = vrot.slane %v2372_v36, %v2556_v34  ;;  %v1983_v10 = vrot.slane %v2372_v36, %v2559_v35 }
 0xc59   : > { %v1987_v22 = vrot.slane %v2372_v36, %v2565_v40  ;;  %v1991_v31 = vrot.slane %v2372_v36, %v2569_v47  ;;  %v1995_v32 = vrot.slane %v2372_v36, %v2573_v51  ;;  %v1999_v20 = vrot.slane %v2372_v36, %v2577_v55 }
 0xc5a   : > { %v2008_v56 = vmul.f32 %v2356_v33, %v1971_v37  ;;  %v2009_v62 = vmul.f32 %v2358_v48, %v1975_v38  ;;  %v2010_v39 = vmul.f32 %v2360_v21, %v1979_v8  ;;  %v2011_v19 = vmul.f32 %v2362_v49, %v1983_v10 }
 0xc5b   : > { %v2012_v24 = vmul.f32 %v2364_v53, %v1987_v22  ;;  %v2013_v25 = vmul.f32 %v2366_v17, %v1991_v31  ;;  %v2014_v34 = vmul.f32 %v2368_v30, %v1995_v32  ;;  %v2015_v35 = vmul.f32 %v2370_v5, %v1999_v20 }
 0xc5c   : > { %2025 = vperm.xlu1 %2283, %v2008_v56  }
 0xc60   : > { %2028 = vperm.xlu1 %2283, %v2009_v62  }
 0xc64   : > { %2031 = vperm.xlu1 %2283, %v2010_v39  }
 0xc68   : > { %2034 = vperm.xlu1 %2283, %v2011_v19  }
 0xc6c   : > { %2037 = vperm.xlu1 %2283, %v2012_v24  }
 0xc70   : > { %2040 = vperm.xlu1 %2283, %v2013_v25  }
 0xc74   : > { %2043 = vperm.xlu1 %2283, %v2014_v34  }
 0xc78   : > { %2046 = vperm.xlu1 %2283, %v2015_v35  }
 0xcdb   : > { %v2026_v14 = vpop.permute.xlu1 %2025 }
 0xcdc   : > { %v2051_v51 = vrot.slane %v2026_v14, %v2531_v57 }
 0xcdf   : > { %v2029_v12 = vpop.permute.xlu1 %2028 }
 0xce0   : > { %v2055_v47 = vrot.slane %v2029_v12, %v2531_v57 }
 0xce2   : > { %v2080_v50 = vsel %vm606_vm2, %v2055_v47, %v2051_v51 }
 0xce3   : > { %v2032_v40 = vpop.permute.xlu1 %2031 }
 0xce4   : > { %v2059_v45 = vrot.slane %v2032_v40, %v2531_v57 }
 0xce6   : > { %v2081_v48 = vsel %vm608_vm3, %v2059_v45, %v2080_v50 }
 0xce7   : > { %v2035_v9 = vpop.permute.xlu1 %2034 }
 0xce8   : > { %v2063_v23 = vrot.slane %v2035_v9, %v2531_v57 }
 0xcea   : > { %v2082_v49 = vsel %vm610_vm4, %v2063_v23, %v2081_v48 }
 0xceb   : > { %v2038_v43 = vpop.permute.xlu1 %2037 }
 0xcec   : > { %v2067_v55 = vrot.slane %v2038_v43, %v2531_v57 }
 0xcee   : > { %v2083_v53 = vsel %vm612_vm5, %v2067_v55, %v2082_v49 }
 0xcef   : > { %v2041_v44 = vpop.permute.xlu1 %2040 }
 0xcf0   : > { %v2071_v33 = vrot.slane %v2041_v44, %v2531_v57 }
 0xcf2   : > { %v2084_v30 = vsel %vm614_vm6, %v2071_v33, %v2083_v53 }
 0xcf3   : > { %v2044_v46 = vpop.permute.xlu1 %2043 }
 0xcf4   : > { %v2075_v21 = vrot.slane %v2044_v46, %v2531_v57 }
 0xcf6   : > { %v2085_v58 = vsel %vm616_vm7, %v2075_v21, %v2084_v30 }
 0xcf7   : > { %v2047_v17 = vpop.permute.xlu1 %2046 }
 0xcf8   : > { %v2079_v5 = vrot.slane %v2047_v17, %v2531_v57 }
 0xcfa   : > { %v2086_v52 = vsel %vm618_vm8, %v2079_v5, %v2085_v58 }
 0xcfb   : > { %2088 = vst.msk [vmem:[%s303_s20] sm:$0xff] %vm1822_vm13, %v2086_v52 }
 0xcfc PF: > { %s17_s24 = sadd.s32 1, %s2387_s24  }
 0xcfd   : > { %p14_p5 = scmp.ge.s32.totalorder %s17_s24, 4  }
 0xcff   :  { %16 = sbr.rel (!%p14_p5) target bundleno = 1 (0x1), region = 81 }

</bundles_post_ra>
